<compile_context>
chip_gen: v5e
topology: v5e:2x2
jax: 0.10.0
libtpu: 0.0.40
codegen_flags: <defaults>
</compile_context>

<pallas_src>
import numpy as np
import jax
import jax.numpy as jnp
from jax.experimental import pallas as pl
from jax.experimental.pallas import tpu as pltpu


def _round_up(v, m):
    return (v + m - 1) // m * m


def spab_forward(x_nchw, w1, w2, w3, *, batch_block=None):
    """SPAB forward. x_nchw: (N, Cin, H, W); w*: PyTorch OIHW (Cout, Cin, 3, 3), bias-free.

    Returns (out, out1, sim_att) in NCHW, matching SPAB.forward.
    """
    N, Cin, H, W = x_nchw.shape
    Cmid = w1.shape[0]
    Cout = w3.shape[0]
    assert Cout == Cin, "residual (out3 + x) requires out_channels == in_channels"
    assert w1.shape == (Cmid, Cin, 3, 3)
    assert w2.shape == (Cmid, Cmid, 3, 3)
    assert w3.shape == (Cout, Cmid, 3, 3)

    HW = H * W
    NB = N if batch_block is None else min(batch_block, N)
    NBLK = pl.cdiv(N, NB)
    Npad = NBLK * NB
    L = NB * HW                      # lane axis per grid step (512 for the test)

    # Channel padding to a sublane multiple (8): aligned tiles, friendly dot shapes.
    CinP = _round_up(Cin, 8)
    CmidP = _round_up(Cmid, 8)
    CoutP = _round_up(Cout, 8)
    assert CoutP == CinP

    dt = x_nchw.dtype

    x = x_nchw
    if Npad != N:
        x = jnp.pad(x, ((0, Npad - N), (0, 0), (0, 0), (0, 0)))
    # (N, C, H, W) -> (NBLK, C, NB*HW): batch folded into the lane axis.
    xr = x.reshape(NBLK, NB, Cin, HW).transpose(0, 2, 1, 3).reshape(NBLK, Cin, L)
    xr = jnp.pad(xr, ((0, 0), (0, CinP - Cin), (0, 0)))

    def prep_w(w, cop, cip):
        co, ci = w.shape[0], w.shape[1]
        # OIHW -> (tap=ky*3+kx, Cout, Cin), zero-padded channels.
        wt = jnp.transpose(w, (2, 3, 0, 1)).reshape(9, co, ci).astype(jnp.float32)
        return jnp.pad(wt, ((0, 0), (0, cop - co), (0, cip - ci)))

    wt1 = prep_w(w1, CmidP, CinP)
    wt2 = prep_w(w2, CmidP, CmidP)
    wt3 = prep_w(w3, CoutP, CmidP)

    # Per-tap validity masks over the flattened (batch-folded) spatial axis and
    # the static cyclic roll amount realising each tap's (dy, dx) shift.
    ys = np.arange(H).reshape(H, 1)
    xs = np.arange(W).reshape(1, W)
    mask_rows = []
    roll_shifts = []
    for ky in range(3):
        for kx in range(3):
            dy, dx = ky - 1, kx - 1
            valid = ((ys + dy >= 0) & (ys + dy < H)
                     & (xs + dx >= 0) & (xs + dx < W)).astype(np.float32)
            mask_rows.append(np.tile(valid.reshape(-1), NB))
            # want patch[p] = act[p + dy*W + dx]  ==  jnp.roll(act, -(dy*W+dx))[p]
            roll_shifts.append(int((-(dy * W + dx)) % L))
    masks = jnp.asarray(np.stack(mask_rows))          # (9, L) f32
    roll_shifts = tuple(roll_shifts)

    def kernel(x_ref, w1_ref, w2_ref, w3_ref, m_ref,
               out_ref, out1_ref, att_ref):
        x_blk = x_ref[0].astype(jnp.float32)          # (CinP, L)
        m_all = m_ref[...]                            # (9, L) f32

        def conv3x3(act, w_ref):
            w = w_ref[...]                            # (9, Co, Ci) f32
            acc = None
            for t, k in enumerate(roll_shifts):
                if k == 0:                            # center tap: no shift, mask == 1
                    patch = act
                else:
                    patch = pltpu.roll(act, shift=k, axis=1) * m_all[t:t + 1, :]
                c = jnp.dot(w[t], patch, preferred_element_type=jnp.float32)
                acc = c if acc is None else acc + c
            return acc                                # (Co, L) f32

        out1 = conv3x3(x_blk, w1_ref)                 # un-activated, returned as-is
        out1_ref[0] = out1.astype(out1_ref.dtype)
        a1 = out1 * jax.nn.sigmoid(out1)              # SiLU
        out2 = conv3x3(a1, w2_ref)
        a2 = out2 * jax.nn.sigmoid(out2)              # SiLU
        out3 = conv3x3(a2, w3_ref)
        sim = jax.nn.sigmoid(out3) - 0.5
        att_ref[0] = sim.astype(att_ref.dtype)
        out_ref[0] = ((out3 + x_blk) * sim).astype(out_ref.dtype)

    out_shapes = (
        jax.ShapeDtypeStruct((NBLK, CoutP, L), dt),   # out
        jax.ShapeDtypeStruct((NBLK, CmidP, L), dt),   # out1
        jax.ShapeDtypeStruct((NBLK, CoutP, L), dt),   # sim_att
    )
    grid_spec = pltpu.PrefetchScalarGridSpec(
        num_scalar_prefetch=0,
        grid=(NBLK,),
        in_specs=[
            pl.BlockSpec((1, CinP, L), lambda b: (b, 0, 0)),
            pl.BlockSpec((9, CmidP, CinP), lambda b: (0, 0, 0)),
            pl.BlockSpec((9, CmidP, CmidP), lambda b: (0, 0, 0)),
            pl.BlockSpec((9, CoutP, CmidP), lambda b: (0, 0, 0)),
            pl.BlockSpec((9, L), lambda b: (0, 0)),
        ],
        out_specs=[
            pl.BlockSpec((1, CoutP, L), lambda b: (b, 0, 0)),
            pl.BlockSpec((1, CmidP, L), lambda b: (b, 0, 0)),
            pl.BlockSpec((1, CoutP, L), lambda b: (b, 0, 0)),
        ],
    )

    out_r, out1_r, att_r = pl.pallas_call(
        kernel,
        out_shape=out_shapes,
        grid_spec=grid_spec,
        compiler_params=pltpu.CompilerParams(
            dimension_semantics=("parallel",)),
    )(xr, wt1, wt2, wt3, masks)

    def back(a, c):
        a = a[:, :c, :].reshape(NBLK, c, NB, HW).transpose(0, 2, 1, 3)
        return a.reshape(Npad, c, H, W)[:N]

    return back(out_r, Cout), back(out1_r, Cmid), back(att_r, Cout)


# ---------------- pure-JAX reference (for correctness check) ----------------
def _conv_ref(x, w):
    return jax.lax.conv_general_dilated(
        x, w, window_strides=(1, 1), padding=((1, 1), (1, 1)),
        dimension_numbers=('NCHW', 'OIHW', 'NCHW'))


def spab_ref(x, w1, w2, w3):
    out1 = _conv_ref(x, w1)
    out2 = _conv_ref(jax.nn.silu(out1), w2)
    out3 = _conv_ref(jax.nn.silu(out2), w3)
    sim_att = jax.nn.sigmoid(out3) - 0.5
    out = (out3 + x) * sim_att
    return out, out1, sim_att


if __name__ == "__main__":
    # SPAB(in_channels=4)  ->  mid_channels = out_channels = 4, bias=False
    N, C, H, W = 2, 4, 16, 16
    key = jax.random.PRNGKey(0)
    kx, k1, k2, k3 = jax.random.split(key, 4)

    x = jax.random.normal(kx, (N, C, H, W), dtype=jnp.float32)
    # deterministic synthetic weights (PyTorch OIHW layout), scaled small
    w1 = 0.2 * jax.random.normal(k1, (C, C, 3, 3), dtype=jnp.float32)
    w2 = 0.2 * jax.random.normal(k2, (C, C, 3, 3), dtype=jnp.float32)
    w3 = 0.2 * jax.random.normal(k3, (C, C, 3, 3), dtype=jnp.float32)

    out, out1, sim_att = spab_forward(x, w1, w2, w3)
    jax.block_until_ready((out, out1, sim_att))

    ref_out, ref_out1, ref_att = spab_ref(x, w1, w2, w3)
    np.testing.assert_allclose(np.asarray(out), np.asarray(ref_out), rtol=2e-4, atol=2e-5)
    np.testing.assert_allclose(np.asarray(out1), np.asarray(ref_out1), rtol=2e-4, atol=2e-5)
    np.testing.assert_allclose(np.asarray(sim_att), np.asarray(ref_att), rtol=2e-4, atol=2e-5)

    print("KERNEL_OK")
</pallas_src>

<mosaic_0001>
module attributes {stable_mosaic.version = 11 : i64} {
  func.func @kernel(%arg0: i32, %arg1: memref<1x8x512xf32, #tpu.memory_space<vmem>>, %arg2: memref<9x8x8xf32, #tpu.memory_space<vmem>>, %arg3: memref<9x8x8xf32, #tpu.memory_space<vmem>>, %arg4: memref<9x8x8xf32, #tpu.memory_space<vmem>>, %arg5: memref<9x512xf32, #tpu.memory_space<vmem>>, %arg6: memref<1x8x512xf32, #tpu.memory_space<vmem>>, %arg7: memref<1x8x512xf32, #tpu.memory_space<vmem>>, %arg8: memref<1x8x512xf32, #tpu.memory_space<vmem>>) attributes {dimension_semantics = [#tpu.dimension_semantics<parallel>], iteration_bounds = array<i64: 1>, scalar_prefetch = 0 : i64, scratch_operands = 0 : i64, tpu.core_type = #tpu.core_type<tc>, window_params = [{transform_indices = @transform_0, window_bounds = array<i64: 1, 8, 512>}, {pipeline_mode = #tpu.pipeline_mode<synchronous>, transform_indices = @transform_1, window_bounds = array<i64: 9, 8, 8>}, {pipeline_mode = #tpu.pipeline_mode<synchronous>, transform_indices = @transform_2, window_bounds = array<i64: 9, 8, 8>}, {pipeline_mode = #tpu.pipeline_mode<synchronous>, transform_indices = @transform_3, window_bounds = array<i64: 9, 8, 8>}, {pipeline_mode = #tpu.pipeline_mode<synchronous>, transform_indices = @transform_4, window_bounds = array<i64: 9, 512>}, {transform_indices = @transform_5, window_bounds = array<i64: 1, 8, 512>}, {transform_indices = @transform_6, window_bounds = array<i64: 1, 8, 512>}, {transform_indices = @transform_7, window_bounds = array<i64: 1, 8, 512>}]} {
    %c0 = arith.constant 0 : index
    %c0_0 = arith.constant 0 : index
    %c0_1 = arith.constant 0 : index
    %0 = vector.load %arg1[%c0, %c0_0, %c0_1] : memref<1x8x512xf32, #tpu.memory_space<vmem>>, vector<1x8x512xf32>
    %1 = vector.shape_cast %0 : vector<1x8x512xf32> to vector<8x512xf32>
    %c0_2 = arith.constant 0 : index
    %c0_3 = arith.constant 0 : index
    %2 = vector.load %arg5[%c0_2, %c0_3] : memref<9x512xf32, #tpu.memory_space<vmem>>, vector<9x512xf32>
    %c0_4 = arith.constant 0 : index
    %c0_5 = arith.constant 0 : index
    %c0_6 = arith.constant 0 : index
    %3 = vector.load %arg2[%c0_4, %c0_5, %c0_6] : memref<9x8x8xf32, #tpu.memory_space<vmem>>, vector<9x8x8xf32>
    %c17_i32 = arith.constant 17 : i32
    %4 = tpu.dynamic_rotate %1 by %c17_i32 dim 1 : vector<8x512xf32>, i32 -> vector<8x512xf32>
    %5 = vector.extract_strided_slice %2 {offsets = [0, 0], sizes = [1, 512], strides = [1, 1]} : vector<9x512xf32> to vector<1x512xf32>
    %6 = vector.broadcast %5 : vector<1x512xf32> to vector<8x512xf32>
    %7 = arith.mulf %4, %6 : vector<8x512xf32>
    %8 = vector.extract_strided_slice %3 {offsets = [0, 0, 0], sizes = [1, 8, 8], strides = [1, 1, 1]} : vector<9x8x8xf32> to vector<1x8x8xf32>
    %9 = vector.shape_cast %8 : vector<1x8x8xf32> to vector<8x8xf32>
    %cst = arith.constant dense<0.000000e+00> : vector<8x512xf32>
    %10 = tpu.matmul %9, %7, %cst {dimension_numbers = #tpu.dot_dimension_numbers<[1], [0], [0], [1], [0, 0, 1, 1], [], []>} : vector<8x8xf32>, vector<8x512xf32>, vector<8x512xf32> -> vector<8x512xf32>
    %c16_i32 = arith.constant 16 : i32
    %11 = tpu.dynamic_rotate %1 by %c16_i32 dim 1 : vector<8x512xf32>, i32 -> vector<8x512xf32>
    %12 = vector.extract_strided_slice %2 {offsets = [1, 0], sizes = [1, 512], strides = [1, 1]} : vector<9x512xf32> to vector<1x512xf32>
    %13 = vector.broadcast %12 : vector<1x512xf32> to vector<8x512xf32>
    %14 = arith.mulf %11, %13 : vector<8x512xf32>
    %15 = vector.extract_strided_slice %3 {offsets = [1, 0, 0], sizes = [1, 8, 8], strides = [1, 1, 1]} : vector<9x8x8xf32> to vector<1x8x8xf32>
    %16 = vector.shape_cast %15 : vector<1x8x8xf32> to vector<8x8xf32>
    %cst_7 = arith.constant dense<0.000000e+00> : vector<8x512xf32>
    %17 = tpu.matmul %16, %14, %cst_7 {dimension_numbers = #tpu.dot_dimension_numbers<[1], [0], [0], [1], [0, 0, 1, 1], [], []>} : vector<8x8xf32>, vector<8x512xf32>, vector<8x512xf32> -> vector<8x512xf32>
    %18 = arith.addf %10, %17 : vector<8x512xf32>
    %c15_i32 = arith.constant 15 : i32
    %19 = tpu.dynamic_rotate %1 by %c15_i32 dim 1 : vector<8x512xf32>, i32 -> vector<8x512xf32>
    %20 = vector.extract_strided_slice %2 {offsets = [2, 0], sizes = [1, 512], strides = [1, 1]} : vector<9x512xf32> to vector<1x512xf32>
    %21 = vector.broadcast %20 : vector<1x512xf32> to vector<8x512xf32>
    %22 = arith.mulf %19, %21 : vector<8x512xf32>
    %23 = vector.extract_strided_slice %3 {offsets = [2, 0, 0], sizes = [1, 8, 8], strides = [1, 1, 1]} : vector<9x8x8xf32> to vector<1x8x8xf32>
    %24 = vector.shape_cast %23 : vector<1x8x8xf32> to vector<8x8xf32>
    %cst_8 = arith.constant dense<0.000000e+00> : vector<8x512xf32>
    %25 = tpu.matmul %24, %22, %cst_8 {dimension_numbers = #tpu.dot_dimension_numbers<[1], [0], [0], [1], [0, 0, 1, 1], [], []>} : vector<8x8xf32>, vector<8x512xf32>, vector<8x512xf32> -> vector<8x512xf32>
    %26 = arith.addf %18, %25 : vector<8x512xf32>
    %c1_i32 = arith.constant 1 : i32
    %27 = tpu.dynamic_rotate %1 by %c1_i32 dim 1 : vector<8x512xf32>, i32 -> vector<8x512xf32>
    %28 = vector.extract_strided_slice %2 {offsets = [3, 0], sizes = [1, 512], strides = [1, 1]} : vector<9x512xf32> to vector<1x512xf32>
    %29 = vector.broadcast %28 : vector<1x512xf32> to vector<8x512xf32>
    %30 = arith.mulf %27, %29 : vector<8x512xf32>
    %31 = vector.extract_strided_slice %3 {offsets = [3, 0, 0], sizes = [1, 8, 8], strides = [1, 1, 1]} : vector<9x8x8xf32> to vector<1x8x8xf32>
    %32 = vector.shape_cast %31 : vector<1x8x8xf32> to vector<8x8xf32>
    %cst_9 = arith.constant dense<0.000000e+00> : vector<8x512xf32>
    %33 = tpu.matmul %32, %30, %cst_9 {dimension_numbers = #tpu.dot_dimension_numbers<[1], [0], [0], [1], [0, 0, 1, 1], [], []>} : vector<8x8xf32>, vector<8x512xf32>, vector<8x512xf32> -> vector<8x512xf32>
    %34 = arith.addf %26, %33 : vector<8x512xf32>
    %35 = vector.extract_strided_slice %3 {offsets = [4, 0, 0], sizes = [1, 8, 8], strides = [1, 1, 1]} : vector<9x8x8xf32> to vector<1x8x8xf32>
    %36 = vector.shape_cast %35 : vector<1x8x8xf32> to vector<8x8xf32>
    %cst_10 = arith.constant dense<0.000000e+00> : vector<8x512xf32>
    %37 = tpu.matmul %36, %1, %cst_10 {dimension_numbers = #tpu.dot_dimension_numbers<[1], [0], [0], [1], [0, 0, 1, 1], [], []>} : vector<8x8xf32>, vector<8x512xf32>, vector<8x512xf32> -> vector<8x512xf32>
    %38 = arith.addf %34, %37 : vector<8x512xf32>
    %c511_i32 = arith.constant 511 : i32
    %39 = tpu.dynamic_rotate %1 by %c511_i32 dim 1 : vector<8x512xf32>, i32 -> vector<8x512xf32>
    %40 = vector.extract_strided_slice %2 {offsets = [5, 0], sizes = [1, 512], strides = [1, 1]} : vector<9x512xf32> to vector<1x512xf32>
    %41 = vector.broadcast %40 : vector<1x512xf32> to vector<8x512xf32>
    %42 = arith.mulf %39, %41 : vector<8x512xf32>
    %43 = vector.extract_strided_slice %3 {offsets = [5, 0, 0], sizes = [1, 8, 8], strides = [1, 1, 1]} : vector<9x8x8xf32> to vector<1x8x8xf32>
    %44 = vector.shape_cast %43 : vector<1x8x8xf32> to vector<8x8xf32>
    %cst_11 = arith.constant dense<0.000000e+00> : vector<8x512xf32>
    %45 = tpu.matmul %44, %42, %cst_11 {dimension_numbers = #tpu.dot_dimension_numbers<[1], [0], [0], [1], [0, 0, 1, 1], [], []>} : vector<8x8xf32>, vector<8x512xf32>, vector<8x512xf32> -> vector<8x512xf32>
    %46 = arith.addf %38, %45 : vector<8x512xf32>
    %c497_i32 = arith.constant 497 : i32
    %47 = tpu.dynamic_rotate %1 by %c497_i32 dim 1 : vector<8x512xf32>, i32 -> vector<8x512xf32>
    %48 = vector.extract_strided_slice %2 {offsets = [6, 0], sizes = [1, 512], strides = [1, 1]} : vector<9x512xf32> to vector<1x512xf32>
    %49 = vector.broadcast %48 : vector<1x512xf32> to vector<8x512xf32>
    %50 = arith.mulf %47, %49 : vector<8x512xf32>
    %51 = vector.extract_strided_slice %3 {offsets = [6, 0, 0], sizes = [1, 8, 8], strides = [1, 1, 1]} : vector<9x8x8xf32> to vector<1x8x8xf32>
    %52 = vector.shape_cast %51 : vector<1x8x8xf32> to vector<8x8xf32>
    %cst_12 = arith.constant dense<0.000000e+00> : vector<8x512xf32>
    %53 = tpu.matmul %52, %50, %cst_12 {dimension_numbers = #tpu.dot_dimension_numbers<[1], [0], [0], [1], [0, 0, 1, 1], [], []>} : vector<8x8xf32>, vector<8x512xf32>, vector<8x512xf32> -> vector<8x512xf32>
    %54 = arith.addf %46, %53 : vector<8x512xf32>
    %c496_i32 = arith.constant 496 : i32
    %55 = tpu.dynamic_rotate %1 by %c496_i32 dim 1 : vector<8x512xf32>, i32 -> vector<8x512xf32>
    %56 = vector.extract_strided_slice %2 {offsets = [7, 0], sizes = [1, 512], strides = [1, 1]} : vector<9x512xf32> to vector<1x512xf32>
    %57 = vector.broadcast %56 : vector<1x512xf32> to vector<8x512xf32>
    %58 = arith.mulf %55, %57 : vector<8x512xf32>
    %59 = vector.extract_strided_slice %3 {offsets = [7, 0, 0], sizes = [1, 8, 8], strides = [1, 1, 1]} : vector<9x8x8xf32> to vector<1x8x8xf32>
    %60 = vector.shape_cast %59 : vector<1x8x8xf32> to vector<8x8xf32>
    %cst_13 = arith.constant dense<0.000000e+00> : vector<8x512xf32>
    %61 = tpu.matmul %60, %58, %cst_13 {dimension_numbers = #tpu.dot_dimension_numbers<[1], [0], [0], [1], [0, 0, 1, 1], [], []>} : vector<8x8xf32>, vector<8x512xf32>, vector<8x512xf32> -> vector<8x512xf32>
    %62 = arith.addf %54, %61 : vector<8x512xf32>
    %c495_i32 = arith.constant 495 : i32
    %63 = tpu.dynamic_rotate %1 by %c495_i32 dim 1 : vector<8x512xf32>, i32 -> vector<8x512xf32>
    %64 = vector.extract_strided_slice %2 {offsets = [8, 0], sizes = [1, 512], strides = [1, 1]} : vector<9x512xf32> to vector<1x512xf32>
    %65 = vector.broadcast %64 : vector<1x512xf32> to vector<8x512xf32>
    %66 = arith.mulf %63, %65 : vector<8x512xf32>
    %67 = vector.extract_strided_slice %3 {offsets = [8, 0, 0], sizes = [1, 8, 8], strides = [1, 1, 1]} : vector<9x8x8xf32> to vector<1x8x8xf32>
    %68 = vector.shape_cast %67 : vector<1x8x8xf32> to vector<8x8xf32>
    %cst_14 = arith.constant dense<0.000000e+00> : vector<8x512xf32>
    %69 = tpu.matmul %68, %66, %cst_14 {dimension_numbers = #tpu.dot_dimension_numbers<[1], [0], [0], [1], [0, 0, 1, 1], [], []>} : vector<8x8xf32>, vector<8x512xf32>, vector<8x512xf32> -> vector<8x512xf32>
    %70 = arith.addf %62, %69 : vector<8x512xf32>
    %c0_15 = arith.constant 0 : index
    %c0_16 = arith.constant 0 : index
    %c0_17 = arith.constant 0 : index
    %71 = vector.load %arg7[%c0_15, %c0_16, %c0_17] : memref<1x8x512xf32, #tpu.memory_space<vmem>>, vector<1x8x512xf32>
    %72 = vector.shape_cast %71 : vector<1x8x512xf32> to vector<8x512xf32>
    %73 = vector.shape_cast %70 : vector<8x512xf32> to vector<1x8x512xf32>
    tpu.vector_store %arg7[%c0_15, %c0_16, %c0_17], %73 {strides = array<i32>} : memref<1x8x512xf32, #tpu.memory_space<vmem>>, vector<1x8x512xf32>,
    %74 = arith.negf %70 : vector<8x512xf32>
    %75 = math.exp %74 : vector<8x512xf32>
    %cst_18 = arith.constant 1.000000e+00 : f32
    %76 = vector.broadcast %cst_18 : f32 to vector<8x512xf32>
    %77 = arith.addf %76, %75 : vector<8x512xf32>
    %78 = arith.divf %76, %77 : vector<8x512xf32>
    %79 = arith.mulf %70, %78 : vector<8x512xf32>
    %c0_19 = arith.constant 0 : index
    %c0_20 = arith.constant 0 : index
    %c0_21 = arith.constant 0 : index
    %80 = vector.load %arg3[%c0_19, %c0_20, %c0_21] : memref<9x8x8xf32, #tpu.memory_space<vmem>>, vector<9x8x8xf32>
    %c17_i32_22 = arith.constant 17 : i32
    %81 = tpu.dynamic_rotate %79 by %c17_i32_22 dim 1 : vector<8x512xf32>, i32 -> vector<8x512xf32>
    %82 = vector.extract_strided_slice %2 {offsets = [0, 0], sizes = [1, 512], strides = [1, 1]} : vector<9x512xf32> to vector<1x512xf32>
    %83 = vector.broadcast %82 : vector<1x512xf32> to vector<8x512xf32>
    %84 = arith.mulf %81, %83 : vector<8x512xf32>
    %85 = vector.extract_strided_slice %80 {offsets = [0, 0, 0], sizes = [1, 8, 8], strides = [1, 1, 1]} : vector<9x8x8xf32> to vector<1x8x8xf32>
    %86 = vector.shape_cast %85 : vector<1x8x8xf32> to vector<8x8xf32>
    %cst_23 = arith.constant dense<0.000000e+00> : vector<8x512xf32>
    %87 = tpu.matmul %86, %84, %cst_23 {dimension_numbers = #tpu.dot_dimension_numbers<[1], [0], [0], [1], [0, 0, 1, 1], [], []>} : vector<8x8xf32>, vector<8x512xf32>, vector<8x512xf32> -> vector<8x512xf32>
    %c16_i32_24 = arith.constant 16 : i32
    %88 = tpu.dynamic_rotate %79 by %c16_i32_24 dim 1 : vector<8x512xf32>, i32 -> vector<8x512xf32>
    %89 = vector.extract_strided_slice %2 {offsets = [1, 0], sizes = [1, 512], strides = [1, 1]} : vector<9x512xf32> to vector<1x512xf32>
    %90 = vector.broadcast %89 : vector<1x512xf32> to vector<8x512xf32>
    %91 = arith.mulf %88, %90 : vector<8x512xf32>
    %92 = vector.extract_strided_slice %80 {offsets = [1, 0, 0], sizes = [1, 8, 8], strides = [1, 1, 1]} : vector<9x8x8xf32> to vector<1x8x8xf32>
    %93 = vector.shape_cast %92 : vector<1x8x8xf32> to vector<8x8xf32>
    %cst_25 = arith.constant dense<0.000000e+00> : vector<8x512xf32>
    %94 = tpu.matmul %93, %91, %cst_25 {dimension_numbers = #tpu.dot_dimension_numbers<[1], [0], [0], [1], [0, 0, 1, 1], [], []>} : vector<8x8xf32>, vector<8x512xf32>, vector<8x512xf32> -> vector<8x512xf32>
    %95 = arith.addf %87, %94 : vector<8x512xf32>
    %c15_i32_26 = arith.constant 15 : i32
    %96 = tpu.dynamic_rotate %79 by %c15_i32_26 dim 1 : vector<8x512xf32>, i32 -> vector<8x512xf32>
    %97 = vector.extract_strided_slice %2 {offsets = [2, 0], sizes = [1, 512], strides = [1, 1]} : vector<9x512xf32> to vector<1x512xf32>
    %98 = vector.broadcast %97 : vector<1x512xf32> to vector<8x512xf32>
    %99 = arith.mulf %96, %98 : vector<8x512xf32>
    %100 = vector.extract_strided_slice %80 {offsets = [2, 0, 0], sizes = [1, 8, 8], strides = [1, 1, 1]} : vector<9x8x8xf32> to vector<1x8x8xf32>
    %101 = vector.shape_cast %100 : vector<1x8x8xf32> to vector<8x8xf32>
    %cst_27 = arith.constant dense<0.000000e+00> : vector<8x512xf32>
    %102 = tpu.matmul %101, %99, %cst_27 {dimension_numbers = #tpu.dot_dimension_numbers<[1], [0], [0], [1], [0, 0, 1, 1], [], []>} : vector<8x8xf32>, vector<8x512xf32>, vector<8x512xf32> -> vector<8x512xf32>
    %103 = arith.addf %95, %102 : vector<8x512xf32>
    %c1_i32_28 = arith.constant 1 : i32
    %104 = tpu.dynamic_rotate %79 by %c1_i32_28 dim 1 : vector<8x512xf32>, i32 -> vector<8x512xf32>
    %105 = vector.extract_strided_slice %2 {offsets = [3, 0], sizes = [1, 512], strides = [1, 1]} : vector<9x512xf32> to vector<1x512xf32>
    %106 = vector.broadcast %105 : vector<1x512xf32> to vector<8x512xf32>
    %107 = arith.mulf %104, %106 : vector<8x512xf32>
    %108 = vector.extract_strided_slice %80 {offsets = [3, 0, 0], sizes = [1, 8, 8], strides = [1, 1, 1]} : vector<9x8x8xf32> to vector<1x8x8xf32>
    %109 = vector.shape_cast %108 : vector<1x8x8xf32> to vector<8x8xf32>
    %cst_29 = arith.constant dense<0.000000e+00> : vector<8x512xf32>
    %110 = tpu.matmul %109, %107, %cst_29 {dimension_numbers = #tpu.dot_dimension_numbers<[1], [0], [0], [1], [0, 0, 1, 1], [], []>} : vector<8x8xf32>, vector<8x512xf32>, vector<8x512xf32> -> vector<8x512xf32>
    %111 = arith.addf %103, %110 : vector<8x512xf32>
    %112 = vector.extract_strided_slice %80 {offsets = [4, 0, 0], sizes = [1, 8, 8], strides = [1, 1, 1]} : vector<9x8x8xf32> to vector<1x8x8xf32>
    %113 = vector.shape_cast %112 : vector<1x8x8xf32> to vector<8x8xf32>
    %cst_30 = arith.constant dense<0.000000e+00> : vector<8x512xf32>
    %114 = tpu.matmul %113, %79, %cst_30 {dimension_numbers = #tpu.dot_dimension_numbers<[1], [0], [0], [1], [0, 0, 1, 1], [], []>} : vector<8x8xf32>, vector<8x512xf32>, vector<8x512xf32> -> vector<8x512xf32>
    %115 = arith.addf %111, %114 : vector<8x512xf32>
    %c511_i32_31 = arith.constant 511 : i32
    %116 = tpu.dynamic_rotate %79 by %c511_i32_31 dim 1 : vector<8x512xf32>, i32 -> vector<8x512xf32>
    %117 = vector.extract_strided_slice %2 {offsets = [5, 0], sizes = [1, 512], strides = [1, 1]} : vector<9x512xf32> to vector<1x512xf32>
    %118 = vector.broadcast %117 : vector<1x512xf32> to vector<8x512xf32>
    %119 = arith.mulf %116, %118 : vector<8x512xf32>
    %120 = vector.extract_strided_slice %80 {offsets = [5, 0, 0], sizes = [1, 8, 8], strides = [1, 1, 1]} : vector<9x8x8xf32> to vector<1x8x8xf32>
    %121 = vector.shape_cast %120 : vector<1x8x8xf32> to vector<8x8xf32>
    %cst_32 = arith.constant dense<0.000000e+00> : vector<8x512xf32>
    %122 = tpu.matmul %121, %119, %cst_32 {dimension_numbers = #tpu.dot_dimension_numbers<[1], [0], [0], [1], [0, 0, 1, 1], [], []>} : vector<8x8xf32>, vector<8x512xf32>, vector<8x512xf32> -> vector<8x512xf32>
    %123 = arith.addf %115, %122 : vector<8x512xf32>
    %c497_i32_33 = arith.constant 497 : i32
    %124 = tpu.dynamic_rotate %79 by %c497_i32_33 dim 1 : vector<8x512xf32>, i32 -> vector<8x512xf32>
    %125 = vector.extract_strided_slice %2 {offsets = [6, 0], sizes = [1, 512], strides = [1, 1]} : vector<9x512xf32> to vector<1x512xf32>
    %126 = vector.broadcast %125 : vector<1x512xf32> to vector<8x512xf32>
    %127 = arith.mulf %124, %126 : vector<8x512xf32>
    %128 = vector.extract_strided_slice %80 {offsets = [6, 0, 0], sizes = [1, 8, 8], strides = [1, 1, 1]} : vector<9x8x8xf32> to vector<1x8x8xf32>
    %129 = vector.shape_cast %128 : vector<1x8x8xf32> to vector<8x8xf32>
    %cst_34 = arith.constant dense<0.000000e+00> : vector<8x512xf32>
    %130 = tpu.matmul %129, %127, %cst_34 {dimension_numbers = #tpu.dot_dimension_numbers<[1], [0], [0], [1], [0, 0, 1, 1], [], []>} : vector<8x8xf32>, vector<8x512xf32>, vector<8x512xf32> -> vector<8x512xf32>
    %131 = arith.addf %123, %130 : vector<8x512xf32>
    %c496_i32_35 = arith.constant 496 : i32
    %132 = tpu.dynamic_rotate %79 by %c496_i32_35 dim 1 : vector<8x512xf32>, i32 -> vector<8x512xf32>
    %133 = vector.extract_strided_slice %2 {offsets = [7, 0], sizes = [1, 512], strides = [1, 1]} : vector<9x512xf32> to vector<1x512xf32>
    %134 = vector.broadcast %133 : vector<1x512xf32> to vector<8x512xf32>
    %135 = arith.mulf %132, %134 : vector<8x512xf32>
    %136 = vector.extract_strided_slice %80 {offsets = [7, 0, 0], sizes = [1, 8, 8], strides = [1, 1, 1]} : vector<9x8x8xf32> to vector<1x8x8xf32>
    %137 = vector.shape_cast %136 : vector<1x8x8xf32> to vector<8x8xf32>
    %cst_36 = arith.constant dense<0.000000e+00> : vector<8x512xf32>
    %138 = tpu.matmul %137, %135, %cst_36 {dimension_numbers = #tpu.dot_dimension_numbers<[1], [0], [0], [1], [0, 0, 1, 1], [], []>} : vector<8x8xf32>, vector<8x512xf32>, vector<8x512xf32> -> vector<8x512xf32>
    %139 = arith.addf %131, %138 : vector<8x512xf32>
    %c495_i32_37 = arith.constant 495 : i32
    %140 = tpu.dynamic_rotate %79 by %c495_i32_37 dim 1 : vector<8x512xf32>, i32 -> vector<8x512xf32>
    %141 = vector.extract_strided_slice %2 {offsets = [8, 0], sizes = [1, 512], strides = [1, 1]} : vector<9x512xf32> to vector<1x512xf32>
    %142 = vector.broadcast %141 : vector<1x512xf32> to vector<8x512xf32>
    %143 = arith.mulf %140, %142 : vector<8x512xf32>
    %144 = vector.extract_strided_slice %80 {offsets = [8, 0, 0], sizes = [1, 8, 8], strides = [1, 1, 1]} : vector<9x8x8xf32> to vector<1x8x8xf32>
    %145 = vector.shape_cast %144 : vector<1x8x8xf32> to vector<8x8xf32>
    %cst_38 = arith.constant dense<0.000000e+00> : vector<8x512xf32>
    %146 = tpu.matmul %145, %143, %cst_38 {dimension_numbers = #tpu.dot_dimension_numbers<[1], [0], [0], [1], [0, 0, 1, 1], [], []>} : vector<8x8xf32>, vector<8x512xf32>, vector<8x512xf32> -> vector<8x512xf32>
    %147 = arith.addf %139, %146 : vector<8x512xf32>
    %148 = arith.negf %147 : vector<8x512xf32>
    %149 = math.exp %148 : vector<8x512xf32>
    %cst_39 = arith.constant 1.000000e+00 : f32
    %150 = vector.broadcast %cst_39 : f32 to vector<8x512xf32>
    %151 = arith.addf %150, %149 : vector<8x512xf32>
    %152 = arith.divf %150, %151 : vector<8x512xf32>
    %153 = arith.mulf %147, %152 : vector<8x512xf32>
    %c0_40 = arith.constant 0 : index
    %c0_41 = arith.constant 0 : index
    %c0_42 = arith.constant 0 : index
    %154 = vector.load %arg4[%c0_40, %c0_41, %c0_42] : memref<9x8x8xf32, #tpu.memory_space<vmem>>, vector<9x8x8xf32>
    %c17_i32_43 = arith.constant 17 : i32
    %155 = tpu.dynamic_rotate %153 by %c17_i32_43 dim 1 : vector<8x512xf32>, i32 -> vector<8x512xf32>
    %156 = vector.extract_strided_slice %2 {offsets = [0, 0], sizes = [1, 512], strides = [1, 1]} : vector<9x512xf32> to vector<1x512xf32>
    %157 = vector.broadcast %156 : vector<1x512xf32> to vector<8x512xf32>
    %158 = arith.mulf %155, %157 : vector<8x512xf32>
    %159 = vector.extract_strided_slice %154 {offsets = [0, 0, 0], sizes = [1, 8, 8], strides = [1, 1, 1]} : vector<9x8x8xf32> to vector<1x8x8xf32>
    %160 = vector.shape_cast %159 : vector<1x8x8xf32> to vector<8x8xf32>
    %cst_44 = arith.constant dense<0.000000e+00> : vector<8x512xf32>
    %161 = tpu.matmul %160, %158, %cst_44 {dimension_numbers = #tpu.dot_dimension_numbers<[1], [0], [0], [1], [0, 0, 1, 1], [], []>} : vector<8x8xf32>, vector<8x512xf32>, vector<8x512xf32> -> vector<8x512xf32>
    %c16_i32_45 = arith.constant 16 : i32
    %162 = tpu.dynamic_rotate %153 by %c16_i32_45 dim 1 : vector<8x512xf32>, i32 -> vector<8x512xf32>
    %163 = vector.extract_strided_slice %2 {offsets = [1, 0], sizes = [1, 512], strides = [1, 1]} : vector<9x512xf32> to vector<1x512xf32>
    %164 = vector.broadcast %163 : vector<1x512xf32> to vector<8x512xf32>
    %165 = arith.mulf %162, %164 : vector<8x512xf32>
    %166 = vector.extract_strided_slice %154 {offsets = [1, 0, 0], sizes = [1, 8, 8], strides = [1, 1, 1]} : vector<9x8x8xf32> to vector<1x8x8xf32>
    %167 = vector.shape_cast %166 : vector<1x8x8xf32> to vector<8x8xf32>
    %cst_46 = arith.constant dense<0.000000e+00> : vector<8x512xf32>
    %168 = tpu.matmul %167, %165, %cst_46 {dimension_numbers = #tpu.dot_dimension_numbers<[1], [0], [0], [1], [0, 0, 1, 1], [], []>} : vector<8x8xf32>, vector<8x512xf32>, vector<8x512xf32> -> vector<8x512xf32>
    %169 = arith.addf %161, %168 : vector<8x512xf32>
    %c15_i32_47 = arith.constant 15 : i32
    %170 = tpu.dynamic_rotate %153 by %c15_i32_47 dim 1 : vector<8x512xf32>, i32 -> vector<8x512xf32>
    %171 = vector.extract_strided_slice %2 {offsets = [2, 0], sizes = [1, 512], strides = [1, 1]} : vector<9x512xf32> to vector<1x512xf32>
    %172 = vector.broadcast %171 : vector<1x512xf32> to vector<8x512xf32>
    %173 = arith.mulf %170, %172 : vector<8x512xf32>
    %174 = vector.extract_strided_slice %154 {offsets = [2, 0, 0], sizes = [1, 8, 8], strides = [1, 1, 1]} : vector<9x8x8xf32> to vector<1x8x8xf32>
    %175 = vector.shape_cast %174 : vector<1x8x8xf32> to vector<8x8xf32>
    %cst_48 = arith.constant dense<0.000000e+00> : vector<8x512xf32>
    %176 = tpu.matmul %175, %173, %cst_48 {dimension_numbers = #tpu.dot_dimension_numbers<[1], [0], [0], [1], [0, 0, 1, 1], [], []>} : vector<8x8xf32>, vector<8x512xf32>, vector<8x512xf32> -> vector<8x512xf32>
    %177 = arith.addf %169, %176 : vector<8x512xf32>
    %c1_i32_49 = arith.constant 1 : i32
    %178 = tpu.dynamic_rotate %153 by %c1_i32_49 dim 1 : vector<8x512xf32>, i32 -> vector<8x512xf32>
    %179 = vector.extract_strided_slice %2 {offsets = [3, 0], sizes = [1, 512], strides = [1, 1]} : vector<9x512xf32> to vector<1x512xf32>
    %180 = vector.broadcast %179 : vector<1x512xf32> to vector<8x512xf32>
    %181 = arith.mulf %178, %180 : vector<8x512xf32>
    %182 = vector.extract_strided_slice %154 {offsets = [3, 0, 0], sizes = [1, 8, 8], strides = [1, 1, 1]} : vector<9x8x8xf32> to vector<1x8x8xf32>
    %183 = vector.shape_cast %182 : vector<1x8x8xf32> to vector<8x8xf32>
    %cst_50 = arith.constant dense<0.000000e+00> : vector<8x512xf32>
    %184 = tpu.matmul %183, %181, %cst_50 {dimension_numbers = #tpu.dot_dimension_numbers<[1], [0], [0], [1], [0, 0, 1, 1], [], []>} : vector<8x8xf32>, vector<8x512xf32>, vector<8x512xf32> -> vector<8x512xf32>
    %185 = arith.addf %177, %184 : vector<8x512xf32>
    %186 = vector.extract_strided_slice %154 {offsets = [4, 0, 0], sizes = [1, 8, 8], strides = [1, 1, 1]} : vector<9x8x8xf32> to vector<1x8x8xf32>
    %187 = vector.shape_cast %186 : vector<1x8x8xf32> to vector<8x8xf32>
    %cst_51 = arith.constant dense<0.000000e+00> : vector<8x512xf32>
    %188 = tpu.matmul %187, %153, %cst_51 {dimension_numbers = #tpu.dot_dimension_numbers<[1], [0], [0], [1], [0, 0, 1, 1], [], []>} : vector<8x8xf32>, vector<8x512xf32>, vector<8x512xf32> -> vector<8x512xf32>
    %189 = arith.addf %185, %188 : vector<8x512xf32>
    %c511_i32_52 = arith.constant 511 : i32
    %190 = tpu.dynamic_rotate %153 by %c511_i32_52 dim 1 : vector<8x512xf32>, i32 -> vector<8x512xf32>
    %191 = vector.extract_strided_slice %2 {offsets = [5, 0], sizes = [1, 512], strides = [1, 1]} : vector<9x512xf32> to vector<1x512xf32>
    %192 = vector.broadcast %191 : vector<1x512xf32> to vector<8x512xf32>
    %193 = arith.mulf %190, %192 : vector<8x512xf32>
    %194 = vector.extract_strided_slice %154 {offsets = [5, 0, 0], sizes = [1, 8, 8], strides = [1, 1, 1]} : vector<9x8x8xf32> to vector<1x8x8xf32>
    %195 = vector.shape_cast %194 : vector<1x8x8xf32> to vector<8x8xf32>
    %cst_53 = arith.constant dense<0.000000e+00> : vector<8x512xf32>
    %196 = tpu.matmul %195, %193, %cst_53 {dimension_numbers = #tpu.dot_dimension_numbers<[1], [0], [0], [1], [0, 0, 1, 1], [], []>} : vector<8x8xf32>, vector<8x512xf32>, vector<8x512xf32> -> vector<8x512xf32>
    %197 = arith.addf %189, %196 : vector<8x512xf32>
    %c497_i32_54 = arith.constant 497 : i32
    %198 = tpu.dynamic_rotate %153 by %c497_i32_54 dim 1 : vector<8x512xf32>, i32 -> vector<8x512xf32>
    %199 = vector.extract_strided_slice %2 {offsets = [6, 0], sizes = [1, 512], strides = [1, 1]} : vector<9x512xf32> to vector<1x512xf32>
    %200 = vector.broadcast %199 : vector<1x512xf32> to vector<8x512xf32>
    %201 = arith.mulf %198, %200 : vector<8x512xf32>
    %202 = vector.extract_strided_slice %154 {offsets = [6, 0, 0], sizes = [1, 8, 8], strides = [1, 1, 1]} : vector<9x8x8xf32> to vector<1x8x8xf32>
    %203 = vector.shape_cast %202 : vector<1x8x8xf32> to vector<8x8xf32>
    %cst_55 = arith.constant dense<0.000000e+00> : vector<8x512xf32>
    %204 = tpu.matmul %203, %201, %cst_55 {dimension_numbers = #tpu.dot_dimension_numbers<[1], [0], [0], [1], [0, 0, 1, 1], [], []>} : vector<8x8xf32>, vector<8x512xf32>, vector<8x512xf32> -> vector<8x512xf32>
    %205 = arith.addf %197, %204 : vector<8x512xf32>
    %c496_i32_56 = arith.constant 496 : i32
    %206 = tpu.dynamic_rotate %153 by %c496_i32_56 dim 1 : vector<8x512xf32>, i32 -> vector<8x512xf32>
    %207 = vector.extract_strided_slice %2 {offsets = [7, 0], sizes = [1, 512], strides = [1, 1]} : vector<9x512xf32> to vector<1x512xf32>
    %208 = vector.broadcast %207 : vector<1x512xf32> to vector<8x512xf32>
    %209 = arith.mulf %206, %208 : vector<8x512xf32>
    %210 = vector.extract_strided_slice %154 {offsets = [7, 0, 0], sizes = [1, 8, 8], strides = [1, 1, 1]} : vector<9x8x8xf32> to vector<1x8x8xf32>
    %211 = vector.shape_cast %210 : vector<1x8x8xf32> to vector<8x8xf32>
    %cst_57 = arith.constant dense<0.000000e+00> : vector<8x512xf32>
    %212 = tpu.matmul %211, %209, %cst_57 {dimension_numbers = #tpu.dot_dimension_numbers<[1], [0], [0], [1], [0, 0, 1, 1], [], []>} : vector<8x8xf32>, vector<8x512xf32>, vector<8x512xf32> -> vector<8x512xf32>
    %213 = arith.addf %205, %212 : vector<8x512xf32>
    %c495_i32_58 = arith.constant 495 : i32
    %214 = tpu.dynamic_rotate %153 by %c495_i32_58 dim 1 : vector<8x512xf32>, i32 -> vector<8x512xf32>
    %215 = vector.extract_strided_slice %2 {offsets = [8, 0], sizes = [1, 512], strides = [1, 1]} : vector<9x512xf32> to vector<1x512xf32>
    %216 = vector.broadcast %215 : vector<1x512xf32> to vector<8x512xf32>
    %217 = arith.mulf %214, %216 : vector<8x512xf32>
    %218 = vector.extract_strided_slice %154 {offsets = [8, 0, 0], sizes = [1, 8, 8], strides = [1, 1, 1]} : vector<9x8x8xf32> to vector<1x8x8xf32>
    %219 = vector.shape_cast %218 : vector<1x8x8xf32> to vector<8x8xf32>
    %cst_59 = arith.constant dense<0.000000e+00> : vector<8x512xf32>
    %220 = tpu.matmul %219, %217, %cst_59 {dimension_numbers = #tpu.dot_dimension_numbers<[1], [0], [0], [1], [0, 0, 1, 1], [], []>} : vector<8x8xf32>, vector<8x512xf32>, vector<8x512xf32> -> vector<8x512xf32>
    %221 = arith.addf %213, %220 : vector<8x512xf32>
    %222 = arith.negf %221 : vector<8x512xf32>
    %223 = math.exp %222 : vector<8x512xf32>
    %cst_60 = arith.constant 1.000000e+00 : f32
    %224 = vector.broadcast %cst_60 : f32 to vector<8x512xf32>
    %225 = arith.addf %224, %223 : vector<8x512xf32>
    %226 = arith.divf %224, %225 : vector<8x512xf32>
    %cst_61 = arith.constant 5.000000e-01 : f32
    %227 = vector.broadcast %cst_61 : f32 to vector<8x512xf32>
    %228 = arith.subf %226, %227 : vector<8x512xf32>
    %c0_62 = arith.constant 0 : index
    %c0_63 = arith.constant 0 : index
    %c0_64 = arith.constant 0 : index
    %229 = vector.load %arg8[%c0_62, %c0_63, %c0_64] : memref<1x8x512xf32, #tpu.memory_space<vmem>>, vector<1x8x512xf32>
    %230 = vector.shape_cast %229 : vector<1x8x512xf32> to vector<8x512xf32>
    %231 = vector.shape_cast %228 : vector<8x512xf32> to vector<1x8x512xf32>
    tpu.vector_store %arg8[%c0_62, %c0_63, %c0_64], %231 {strides = array<i32>} : memref<1x8x512xf32, #tpu.memory_space<vmem>>, vector<1x8x512xf32>,
    %232 = arith.addf %221, %1 : vector<8x512xf32>
    %233 = arith.mulf %232, %228 : vector<8x512xf32>
    %c0_65 = arith.constant 0 : index
    %c0_66 = arith.constant 0 : index
    %c0_67 = arith.constant 0 : index
    %234 = vector.load %arg6[%c0_65, %c0_66, %c0_67] : memref<1x8x512xf32, #tpu.memory_space<vmem>>, vector<1x8x512xf32>
    %235 = vector.shape_cast %234 : vector<1x8x512xf32> to vector<8x512xf32>
    %236 = vector.shape_cast %233 : vector<8x512xf32> to vector<1x8x512xf32>
    tpu.vector_store %arg6[%c0_65, %c0_66, %c0_67], %236 {strides = array<i32>} : memref<1x8x512xf32, #tpu.memory_space<vmem>>, vector<1x8x512xf32>,
    return
  }
  func.func @transform_0(%arg0: i32) -> (i32, i32, i32) {
    %c0_i32 = arith.constant 0 : i32
    %c0_i32_0 = arith.constant 0 : i32
    %c0_i32_1 = arith.constant 0 : i32
    return %arg0, %c0_i32, %c0_i32_0 : i32, i32, i32
  }
  func.func @transform_1(%arg0: i32) -> (i32, i32, i32) {
    %c0_i32 = arith.constant 0 : i32
    %c0_i32_0 = arith.constant 0 : i32
    %c0_i32_1 = arith.constant 0 : i32
    %c0_i32_2 = arith.constant 0 : i32
    return %c0_i32, %c0_i32_0, %c0_i32_1 : i32, i32, i32
  }
  func.func @transform_2(%arg0: i32) -> (i32, i32, i32) {
    %c0_i32 = arith.constant 0 : i32
    %c0_i32_0 = arith.constant 0 : i32
    %c0_i32_1 = arith.constant 0 : i32
    %c0_i32_2 = arith.constant 0 : i32
    return %c0_i32, %c0_i32_0, %c0_i32_1 : i32, i32, i32
  }
  func.func @transform_3(%arg0: i32) -> (i32, i32, i32) {
    %c0_i32 = arith.constant 0 : i32
    %c0_i32_0 = arith.constant 0 : i32
    %c0_i32_1 = arith.constant 0 : i32
    %c0_i32_2 = arith.constant 0 : i32
    return %c0_i32, %c0_i32_0, %c0_i32_1 : i32, i32, i32
  }
  func.func @transform_4(%arg0: i32) -> (i32, i32) {
    %c0_i32 = arith.constant 0 : i32
    %c0_i32_0 = arith.constant 0 : i32
    %c0_i32_1 = arith.constant 0 : i32
    return %c0_i32, %c0_i32_0 : i32, i32
  }
  func.func @transform_5(%arg0: i32) -> (i32, i32, i32) {
    %c0_i32 = arith.constant 0 : i32
    %c0_i32_0 = arith.constant 0 : i32
    %c0_i32_1 = arith.constant 0 : i32
    return %arg0, %c0_i32, %c0_i32_0 : i32, i32, i32
  }
  func.func @transform_6(%arg0: i32) -> (i32, i32, i32) {
    %c0_i32 = arith.constant 0 : i32
    %c0_i32_0 = arith.constant 0 : i32
    %c0_i32_1 = arith.constant 0 : i32
    return %arg0, %c0_i32, %c0_i32_0 : i32, i32, i32
  }
  func.func @transform_7(%arg0: i32) -> (i32, i32, i32) {
    %c0_i32 = arith.constant 0 : i32
    %c0_i32_0 = arith.constant 0 : i32
    %c0_i32_1 = arith.constant 0 : i32
    return %arg0, %c0_i32, %c0_i32_0 : i32, i32, i32
  }
}

</mosaic_0001>

<bundles_post_ra>
// kernel: tpu_custom_call.1
= control target key start
LH: loop header
LB: loop body
LE: loop exit
PB: predicated region body
PF: predicated region fallthrough
CT: control target
= control target key end

     0   :  { %13 = vsyncpa [#allocation3], 0  ;;  %s3394_s28 = smov 16   ;;  %s3395_s29 = smov 17   ;;  %s4444_s0 = inlined_call_operand.vmem [shape: f32[1,8,512], index: 0, kind: input, shape index: {}]   ;;  %s4445_s1 = inlined_call_operand.vmem [shape: f32[9,8,8], index: 1, kind: input, shape index: {}]   ;;  %s4446_s2 = inlined_call_operand.vmem [shape: f32[9,8,8], index: 2, kind: input, shape index: {}]   ;;  %s4447_s3 = inlined_call_operand.vmem [shape: f32[9,8,8], index: 3, kind: input, shape index: {}]   ;;  %s4448_s4 = inlined_call_operand.vmem [shape: f32[9,512], index: 4, kind: input, shape index: {}]   ;;  %s4449_s5 = inlined_call_operand.hbm [shape: f32[1,8,512], index: 5, kind: output, shape index: {0}]   ;;  %s4450_s6 = inlined_call_operand.hbm [shape: f32[1,8,512], index: 6, kind: output, shape index: {1}]   ;;  %s4451_s7 = inlined_call_operand.hbm [shape: f32[1,8,512], index: 7, kind: output, shape index: {2}]  }
   0x1   :  { %v3448_v0 = vld [vmem:[%s4444_s0 + $0x18] sm:$0xff]  ;;  %v3453_v1 = vld [vmem:[%s4444_s0 + $0x8] sm:$0xff] }
   0x2   :  { %75 = vrot.lane.b32.xlu1 %v3448_v0, %s3394_s28  ;;  %71 = vrot.lane.b32.xlu0 %v3453_v1, %s3394_s28 }
   0x3   :  { %48 = vrot.lane.b32.xlu2 %v3453_v1, %s3395_s29 }
   0x4   :  { %14 = vsyncpa [#allocation5], 0  ;;  %v3464_v2 = vld [vmem:[%s4444_s0 + $0x10] sm:$0xff]  ;;  %v3469_v3 = vld [vmem:[%s4444_s0] sm:$0xff]  ;;  %s3396_s11 = smov 15   ;;  %s3397_s12 = smov 1   ;;  %v54_v7 = vlaneseq }
   0x5   :  { %s3398_s13 = smov 127   ;;  %s3399_s14 = smov 113   ;;  %v3536_v11 = vld [vmem:[%s4448_s4] sm:$0xff]  ;;  %v3541_v12 = vld [vmem:[%s4448_s4 + $0x8] sm:$0xff]  ;;  %v3546_v13 = vld [vmem:[%s4448_s4 + $0x10] sm:$0xff]  ;;  %vm90_vm2 = vcmask 64512  }
   0x6   :  { %s3400_s15 = smov 112   ;;  %s3401_s16 = smov 111   ;;  %v3531_v10 = vand.u32 127, %v54_v7  ;;  %v3551_v14 = vld [vmem:[%s4448_s4 + $0x18] sm:$0xff]  ;;  %v3556_v16 = vperm.slane %v3536_v11, 1  ;;  %v3559_v17 = vperm.slane %v3541_v12, 1 }
   0x7   :  { %v3562_v18 = vperm.slane %v3546_v13, 1  ;;  %v3565_v19 = vperm.slane %v3551_v14, 1  ;;  %v3568_v20 = vperm.slane %v3546_v13, 0  ;;  %v38_v32 = vld [vmem:[%s4445_s1 + $0x8] sm:$0xff]  ;;  %v3590_v34 = vperm.slane %v3541_v12, 2  ;;  %v37_v49 = vld [vmem:[%s4445_s1] sm:$0xff] }
   0x8   :  { %vm56_vm0 = vcmp.lt.s32.totalorder %v3531_v10, 17  ;;  %vm77_vm1 = vcmp.lt.s32.totalorder %v3531_v10, 16  ;;  %vm265_vm3 = vcmp.lt.s32.totalorder %v3531_v10, 15  ;;  %v3595_v35 = vperm.slane %v3536_v11, 0  ;;  %v39_v62 = vld [vmem:[%s4445_s1 + $0x10] sm:$0xff]  ;;  %s3403_s22 = smov [#allocation6]  }
   0x9   :  { %v3598_v36 = vperm.slane %v3541_v12, 0  ;;  %v3601_v37 = vperm.slane %v3551_v14, 0  ;;  %v3626_v50 = vperm.slane %v3546_v13, 2  ;;  %v3629_v51 = vperm.slane %v3536_v11, 2  ;;  %s3103_s23 = sshll.u32 %s3403_s22, 4  ;;  %s3105_s26 = sshll.u32 %s4451_s7, 4  ;;  %s3104_s23 = int_to_ptr.vmem [resolvable:$true] %s3103_s23  ;;  %s3106_s26 = int_to_ptr.hbm [resolvable:$true] %s3105_s26 }
   0xa   :  { %73 = vrot.lane.b32.xlu0 %v3464_v2, %s3394_s28  ;;  %69 = vrot.lane.b32.xlu1 %v3469_v3, %s3394_s28  ;;  %v3632_v52 = vperm.slane %v3551_v14, 2  ;;  %vm373_vm4 = vcmp.lt.s32.totalorder %v3531_v10, 1  ;;  %v3653_v63 = vperm.slane %v3546_v13, 3  ;;  %vm568_vm5 = vcmp.lt.s32.totalorder %v3531_v10, 127  ;;  %s3404_s27 = smov [#allocation2]   ;;  %s3083_s10 = sshll.u32 %s4449_s5, 4  ;;  %s3084_s10 = int_to_ptr.hbm [resolvable:$true] %s3083_s10 }
   0xb   :  { %50 = vrot.lane.b32.xlu2 %v3464_v2, %s3395_s29  ;;  %vm4480_vm6 = vcmp.lt.s32.totalorder %v3531_v10, 113  ;;  %vm4479_vm7 = vcmp.lt.s32.totalorder %v3531_v10, 112  ;;  %vm4478_vm8 = vcmp.lt.s32.totalorder %v3531_v10, 111  ;;  %s3081_s30 = sshll.u32 %s3404_s27, 4  ;;  %s3082_s30 = int_to_ptr.vmem [resolvable:$true] %s3081_s30 }
  0x12   :  { %52 = vrot.lane.b32.xlu0 %v3448_v0, %s3395_s29  ;;  %46 = vrot.lane.b32.xlu1 %v3469_v3, %s3395_s29 }
  0x13   :  { %259 = vrot.lane.b32.xlu2 %v3453_v1, %s3396_s11 }
  0x1a   :  { %261 = vrot.lane.b32.xlu0 %v3464_v2, %s3396_s11  ;;  %263 = vrot.lane.b32.xlu1 %v3448_v0, %s3396_s11 }
  0x1b   :  { %257 = vrot.lane.b32.xlu2 %v3469_v3, %s3396_s11 }
  0x22   :  { %367 = vrot.lane.b32.xlu0 %v3453_v1, %s3397_s12  ;;  %369 = vrot.lane.b32.xlu1 %v3464_v2, %s3397_s12 }
  0x23   :  { %371 = vrot.lane.b32.xlu2 %v3448_v0, %s3397_s12 }
  0x2a   :  { %365 = vrot.lane.b32.xlu0 %v3469_v3, %s3397_s12  ;;  %560 = vrot.lane.b32.xlu1 %v3469_v3, %s3398_s13 }
  0x2b   :  { %564 = vrot.lane.b32.xlu2 %v3464_v2, %s3398_s13 }
  0x32   :  { %566 = vrot.lane.b32.xlu0 %v3448_v0, %s3398_s13  ;;  %562 = vrot.lane.b32.xlu1 %v3453_v1, %s3398_s13 }
  0x33   :  { %668 = vrot.lane.b32.xlu2 %v3469_v3, %s3399_s14 }
  0x3a   :  { %672 = vrot.lane.b32.xlu0 %v3464_v2, %s3399_s14  ;;  %674 = vrot.lane.b32.xlu1 %v3448_v0, %s3399_s14 }
  0x3b   :  { %670 = vrot.lane.b32.xlu2 %v3453_v1, %s3399_s14 }
  0x42   :  { %776 = vrot.lane.b32.xlu0 %v3469_v3, %s3400_s15  ;;  %780 = vrot.lane.b32.xlu1 %v3464_v2, %s3400_s15 }
  0x43   :  { %782 = vrot.lane.b32.xlu2 %v3448_v0, %s3400_s15 }
  0x4a   :  { %778 = vrot.lane.b32.xlu0 %v3453_v1, %s3400_s15  ;;  %884 = vrot.lane.b32.xlu1 %v3469_v3, %s3401_s16 }
  0x4b   :  { %888 = vrot.lane.b32.xlu2 %v3464_v2, %s3401_s16 }
  0x52   :  { %890 = vrot.lane.b32.xlu0 %v3448_v0, %s3401_s16  ;;  %886 = vrot.lane.b32.xlu1 %v3453_v1, %s3401_s16 }
  0x5d   :  { %v49_v4 = vpop.permute.xlu2 %48 }
  0x65   :  { %v51_v5 = vpop.permute.xlu2 %50 }
  0x66   :  { %v58_v21 = vsel %vm56_vm0, %v49_v4, %v51_v5 }
  0x67   :  { %v67_v33 = vmul.f32 %v3568_v20, %v58_v21  ;;  %v40_v21 = vld [vmem:[%s4445_s1 + $0x18] sm:$0xff] }
  0x6d   :  { %v3529_v6 = vpop.permute.xlu2 %259 }
  0x74   :  { %v76_v8 = vpop.permute.xlu1 %75  ;;  %v72_v9 = vpop.permute.xlu0 %71 }
  0x75   :  { %v258_v15 = vpop.permute.xlu2 %257 }
  0x76   :  { %v268_v38 = vsel %vm265_vm3, %v258_v15, %v3529_v6 }
  0x77   :  { %v275_v45 = vmul.f32 %v3590_v34, %v268_v38  ;;  %v3705_v38 = vperm.slane %v3541_v12, 5 }
  0x79   :  { %4485 = vst [vmem:[#allocation12_spill] sm:$0xff] %v3705_v38 }
  0x7c   :  { %v74_v22 = vpop.permute.xlu0 %73  ;;  %v70_v23 = vpop.permute.xlu1 %69 }
  0x7d   :  { %v81_v24 = vsel %vm77_vm1, %v76_v8, %v70_v23  ;;  %v80_v25 = vsel %vm77_vm1, %v70_v23, %v72_v9  ;;  %v79_v26 = vsel %vm77_vm1, %v72_v9, %v74_v22  ;;  %v78_v27 = vsel %vm77_vm1, %v74_v22, %v76_v8  ;;  %v3607_v39 = vpop.permute.xlu2 %371 }
  0x7e   :  { %v86_v28 = vmul.f32 %v3556_v16, %v81_v24  ;;  %v87_v29 = vmul.f32 %v3559_v17, %v80_v25  ;;  %v88_v30 = vmul.f32 %v3562_v18, %v79_v26  ;;  %v89_v31 = vmul.f32 %v3565_v19, %v78_v27 }
  0x7f   :  { %v3674_v23 = vperm.slane %v3536_v11, 3  ;;  %v3677_v24 = vperm.slane %v3541_v12, 3 }
  0x80   :  { %109 = vmatpush.msra.mxu0 %v86_v28  ;;  %129 = vmatpush.msra.mxu1 %v87_v29  ;;  %v41_v29 = vld [vmem:[%s4445_s1 + $0x20] sm:$0xff] }
  0x81   :  { %149 = vmatpush.msra.mxu2 %v88_v30  ;;  %169 = vmatpush.msra.mxu3 %v89_v31  ;;  %v3696_v31 = vperm.slane %v3546_v13, 5 }
  0x82   :  { %3124 = vmatmul.msk.f32.vlgmr.msra.gmra.mxu1 %vm90_vm2, %v38_v32  ;;  %3125 = vmatmul.msk.f32.vlgmr.msra.gmra.mxu2 %vm90_vm2, %v38_v32 }
  0x83   :  { %3126 = vmatmul.msk.f32.vlgmr.msra.gmra.mxu3 %vm90_vm2, %v38_v32  ;;  %232 = vmatpush.msrb.mxu2 %v67_v33  ;;  %4482 = vst [vmem:[#allocation9_spill] sm:$0xff] %v3696_v31  ;;  %v3702_v33 = vperm.slane %v3536_v11, 5 }
  0x84   :  { %v53_v40 = vpop.permute.xlu0 %52  ;;  %v47_v41 = vpop.permute.xlu1 %46  ;;  %3123 = vmatmul.msk.f32.vlgmr.msra.gmra.mxu0 %vm90_vm2, %v38_v32  ;;  %v3699_v32 = vperm.slane %v3551_v14, 5 }
  0x85   :  { %v57_v42 = vsel %vm56_vm0, %v51_v5, %v53_v40  ;;  %v59_v43 = vsel %vm56_vm0, %v47_v41, %v49_v4  ;;  %v60_v44 = vsel %vm56_vm0, %v53_v40, %v47_v41  ;;  %v565_v58 = vpop.permute.xlu2 %564  ;;  %v3656_v4 = vperm.slane %v3551_v14, 3  ;;  %4484 = vst [vmem:[#allocation11_spill] sm:$0xff] %v3702_v33 }
  0x86   :  { %v65_v46 = vmul.f32 %v3595_v35, %v60_v44  ;;  %v66_v47 = vmul.f32 %v3598_v36, %v59_v43  ;;  %v68_v48 = vmul.f32 %v3601_v37, %v57_v42  ;;  %4483 = vst [vmem:[#allocation10_spill] sm:$0xff] %v3699_v32  ;;  %v3711_v41 = vperm.slane %v3536_v11, 6 }
  0x88   :  { %192 = vmatpush.msrb.mxu0 %v65_v46  ;;  %212 = vmatpush.msrb.mxu1 %v66_v47  ;;  %4486 = vst [vmem:[#allocation13_spill] sm:$0xff] %v3711_v41 }
  0x89   :  { %252 = vmatpush.msrb.mxu3 %v68_v48 }
  0x8a   :  { %316 = vmatpush.msra.mxu1 %v275_v45  ;;  %3129 = vmatmul.msk.f32.vlgmr.msrb.gmra.mxu2 %vm90_vm2, %v37_v49 }
  0x8b   :  { %3128 = vmatmul.msk.f32.vlgmr.msrb.gmra.mxu1 %vm90_vm2, %v37_v49  ;;  %3130 = vmatmul.msk.f32.vlgmr.msrb.gmra.mxu3 %vm90_vm2, %v37_v49 }
  0x8c   :  { %v262_v53 = vpop.permute.xlu0 %261  ;;  %v264_v54 = vpop.permute.xlu1 %263  ;;  %3127 = vmatmul.msk.f32.vlgmr.msrb.gmra.mxu0 %vm90_vm2, %v37_v49  ;;  %v42_v49 = vld [vmem:[%s4445_s1 + $0x28] sm:$0xff] }
  0x8d   :  { %v267_v55 = vsel %vm265_vm3, %v3529_v6, %v262_v53  ;;  %v266_v56 = vsel %vm265_vm3, %v262_v53, %v264_v54  ;;  %v269_v57 = vsel %vm265_vm3, %v264_v54, %v258_v15  ;;  %v669_v22 = vpop.permute.xlu2 %668  ;;  %v3734_v54 = vperm.slane %v3541_v12, 6 }
  0x8e   :  { %v276_v59 = vmul.f32 %v3626_v50, %v267_v55  ;;  %v274_v60 = vmul.f32 %v3629_v51, %v269_v57  ;;  %v277_v61 = vmul.f32 %v3632_v52, %v266_v56  ;;  %v3737_v55 = vperm.slane %v3546_v13, 6 }
  0x8f   :  { %4487 = vst [vmem:[#allocation14_spill] sm:$0xff] %v3734_v54  ;;  %v3740_v56 = vperm.slane %v3551_v14, 6 }
  0x90   :  { %296 = vmatpush.msra.mxu0 %v274_v60  ;;  %336 = vmatpush.msra.mxu2 %v276_v59  ;;  %4488 = vst [vmem:[#allocation15_spill] sm:$0xff] %v3737_v55 }
  0x91   :  { %356 = vmatpush.msra.mxu3 %v277_v61  ;;  %4489 = vst [vmem:[#allocation16_spill] sm:$0xff] %v3740_v56 }
  0x92   :  { %3133 = vmatmul.msk.f32.vlgmr.msra.gmra.mxu2 %vm90_vm2, %v39_v62 }
  0x93   :  { %3132 = vmatmul.msk.f32.vlgmr.msra.gmra.mxu1 %vm90_vm2, %v39_v62  ;;  %3134 = vmatmul.msk.f32.vlgmr.msra.gmra.mxu3 %vm90_vm2, %v39_v62 }
  0x94   :  { %v368_v5 = vpop.permute.xlu0 %367  ;;  %v370_v6 = vpop.permute.xlu1 %369  ;;  %3131 = vmatmul.msk.f32.vlgmr.msra.gmra.mxu0 %vm90_vm2, %v39_v62 }
  0x95   :  { %v374_v7 = vsel %vm373_vm4, %v370_v6, %v3607_v39  ;;  %v375_v8 = vsel %vm373_vm4, %v368_v5, %v370_v6  ;;  %v671_v30 = vpop.permute.xlu2 %670 }
  0x96   :  { %v384_v9 = vmul.f32 %v3653_v63, %v375_v8  ;;  %v385_v15 = vmul.f32 %v3656_v4, %v374_v7  ;;  %v679_v42 = vsel %vm4480_vm6, %v669_v22, %v671_v30  ;;  %v43_v7 = vld [vmem:[%s4445_s1 + $0x30] sm:$0xff]  ;;  %v3760_v8 = vperm.slane %v3551_v14, 7 }
  0x97   :  { %v685_v53 = vmul.f32 %v3711_v41, %v679_v42  ;;  %v3803_v42 = vld [vmem:[%s4448_s4 + $0x30] ss:$0 sm:$0xff] }
  0x98   :  { %444 = vmatpush.msrb.mxu2 %v384_v9  ;;  %464 = vmatpush.msrb.mxu3 %v385_v15  ;;  %4490 = vst [vmem:[#allocation17_spill] sm:$0xff] %v3760_v8  ;;  %v3763_v15 = vperm.slane %v3546_v13, 7  ;;  %v44_v13 = vld [vmem:[%s4445_s1 + $0x38] sm:$0xff] }
  0x99   :  { %4495 = vst [vmem:[#allocation22_spill] sm:$0xff] %v3803_v42 }
  0x9a   :  { %531 = vmatpush.msra.mxu2 %v3464_v2  ;;  %551 = vmatpush.msra.mxu3 %v3448_v0  ;;  %4491 = vst [vmem:[#allocation18_spill] sm:$0xff] %v3763_v15 }
  0x9b   :  { %3137 = vmatmul.msk.f32.vlgmr.msrb.gmra.mxu2 %vm90_vm2, %v40_v21  ;;  %3138 = vmatmul.msk.f32.vlgmr.msrb.gmra.mxu3 %vm90_vm2, %v40_v21 }
  0x9c   :  { %v366_v25 = vpop.permute.xlu0 %365  ;;  %v561_v26 = vpop.permute.xlu1 %560 }
  0x9d   :  { %v376_v27 = vsel %vm373_vm4, %v366_v25, %v368_v5  ;;  %v377_v2 = vsel %vm373_vm4, %v3607_v39, %v366_v25  ;;  %v783_v9 = vpop.permute.xlu2 %782 }
  0x9e   :  { %v382_v0 = vmul.f32 %v3674_v23, %v377_v2  ;;  %v383_v28 = vmul.f32 %v3677_v24, %v376_v27  ;;  %v3779_v2 = vperm.slane %v3536_v11, 7 }
  0xa0   :  { %404 = vmatpush.msrb.mxu0 %v382_v0  ;;  %424 = vmatpush.msrb.mxu1 %v383_v28  ;;  %4492 = vst [vmem:[#allocation19_spill] sm:$0xff] %v3779_v2  ;;  %v3782_v0 = vperm.slane %v3541_v12, 7  ;;  %v3796_v12 = vld [vmem:[%s4448_s4 + $0x38] ss:$0 sm:$0xff] }
  0xa1   :  { %3135 = vmatmul.msk.f32.vlgmr.msrb.gmra.mxu0 %vm90_vm2, %v40_v21  ;;  %3136 = vmatmul.msk.f32.vlgmr.msrb.gmra.mxu1 %vm90_vm2, %v40_v21  ;;  %4494 = vst [vmem:[#allocation21_spill] sm:$0xff] %v3796_v12 }
  0xa2   :  { %491 = vmatpush.msra.mxu0 %v3469_v3  ;;  %511 = vmatpush.msra.mxu1 %v3453_v1  ;;  %4493 = vst [vmem:[#allocation20_spill] sm:$0xff] %v3782_v0 }
  0xa3   :  { %3141 = vmatmul.msk.f32.vlgmr.msra.gmra.mxu2 %vm90_vm2, %v41_v29  ;;  %3142 = vmatmul.msk.f32.vlgmr.msra.gmra.mxu3 %vm90_vm2, %v41_v29 }
  0xa4   :  { %v567_v39 = vpop.permute.xlu0 %566  ;;  %v563_v40 = vpop.permute.xlu1 %562 }
  0xa5   :  { %v569_v43 = vsel %vm568_vm5, %v565_v58, %v567_v39  ;;  %v572_v44 = vsel %vm568_vm5, %v567_v39, %v561_v26  ;;  %v570_v3 = vsel %vm568_vm5, %v563_v40, %v565_v58  ;;  %v571_v1 = vsel %vm568_vm5, %v561_v26, %v563_v40 }
  0xa6   :  { %v579_v45 = vmul.f32 %v3696_v31, %v569_v43  ;;  %v580_v46 = vmul.f32 %v3699_v32, %v572_v44  ;;  %v577_v47 = vmul.f32 %v3702_v33, %v571_v1  ;;  %v578_v48 = vmul.f32 %v3705_v38, %v570_v3  ;;  %v889_v43 = vpop.permute.xlu2 %888  ;;  %v3808_v44 = vld [vmem:[%s4448_s4 + $0x20] ss:$0 sm:$0xff]  ;;  %v3813_v3 = vld [vmem:[%s4448_s4 + $0x28] ss:$0 sm:$0xff] }
  0xa7   :  { %4496 = vst [vmem:[#allocation23_spill] sm:$0xff] %v3808_v44 }
  0xa8   :  { %599 = vmatpush.msrb.mxu0 %v577_v47  ;;  %619 = vmatpush.msrb.mxu1 %v578_v48  ;;  %4497 = vst [vmem:[#allocation24_spill] sm:$0xff] %v3813_v3 }
  0xa9   :  { %639 = vmatpush.msrb.mxu2 %v579_v45  ;;  %659 = vmatpush.msrb.mxu3 %v580_v46 }
  0xaa   :  { %3139 = vmatmul.msk.f32.vlgmr.msra.gmra.mxu0 %vm90_vm2, %v41_v29  ;;  %3140 = vmatmul.msk.f32.vlgmr.msra.gmra.mxu1 %vm90_vm2, %v41_v29 }
  0xab   :  { %3145 = vmatmul.msk.f32.vlgmr.msrb.gmra.mxu2 %vm90_vm2, %v42_v49  ;;  %3146 = vmatmul.msk.f32.vlgmr.msrb.gmra.mxu3 %vm90_vm2, %v42_v49 }
  0xac   :  { %v673_v57 = vpop.permute.xlu0 %672  ;;  %v675_v58 = vpop.permute.xlu1 %674  ;;  %707 = vmatpush.msra.mxu0 %v685_v53 }
  0xad   :  { %v678_v59 = vsel %vm4480_vm6, %v671_v30, %v673_v57  ;;  %v677_v60 = vsel %vm4480_vm6, %v673_v57, %v675_v58  ;;  %v680_v61 = vsel %vm4480_vm6, %v675_v58, %v669_v22 }
  0xae   :  { %v686_v62 = vmul.f32 %v3734_v54, %v678_v59  ;;  %v687_v5 = vmul.f32 %v3737_v55, %v677_v60  ;;  %v688_v6 = vmul.f32 %v3740_v56, %v680_v61  ;;  %v45_v60 = vld [vmem:[%s4445_s1 + $0x40] sm:$0xff] }
  0xb0   :  { %727 = vmatpush.msra.mxu1 %v686_v62  ;;  %747 = vmatpush.msra.mxu2 %v687_v5 }
  0xb1   :  { %767 = vmatpush.msra.mxu3 %v688_v6 }
  0xb2   :  { %3143 = vmatmul.msk.f32.vlgmr.msrb.gmra.mxu0 %vm90_vm2, %v42_v49  ;;  %3144 = vmatmul.msk.f32.vlgmr.msrb.gmra.mxu1 %vm90_vm2, %v42_v49 }
  0xb3   :  { %3149 = vmatmul.msk.f32.vlgmr.msra.gmra.mxu2 %vm90_vm2, %v43_v7  ;;  %3150 = vmatmul.msk.f32.vlgmr.msra.gmra.mxu3 %vm90_vm2, %v43_v7 }
  0xb4   :  { %v777_v21 = vpop.permute.xlu0 %776  ;;  %v781_v22 = vpop.permute.xlu1 %780 }
  0xb5   :  { %v788_v25 = vsel %vm4479_vm7, %v783_v9, %v777_v21  ;;  %v785_v26 = vsel %vm4479_vm7, %v781_v22, %v783_v9 }
  0xb6   :  { %v796_v27 = vmul.f32 %v3760_v8, %v788_v25  ;;  %v795_v14 = vmul.f32 %v3763_v15, %v785_v26 }
  0xb8   :  { %855 = vmatpush.msrb.mxu2 %v795_v14  ;;  %875 = vmatpush.msrb.mxu3 %v796_v27 }
  0xba   :  { %3147 = vmatmul.msk.f32.vlgmr.msra.gmra.mxu0 %vm90_vm2, %v43_v7  ;;  %3148 = vmatmul.msk.f32.vlgmr.msra.gmra.mxu1 %vm90_vm2, %v43_v7 }
  0xbb   :  { %3153 = vmatmul.msk.f32.vlgmr.msrb.gmra.mxu2 %vm90_vm2, %v44_v13  ;;  %3154 = vmatmul.msk.f32.vlgmr.msrb.gmra.mxu3 %vm90_vm2, %v44_v13 }
  0xbc   :  { %v779_v28 = vpop.permute.xlu0 %778  ;;  %v885_v29 = vpop.permute.xlu1 %884 }
  0xbd   :  { %v786_v30 = vsel %vm4479_vm7, %v779_v28, %v781_v22  ;;  %v787_v39 = vsel %vm4479_vm7, %v777_v21, %v779_v28 }
  0xbe   :  { %v793_v40 = vmul.f32 %v3779_v2, %v787_v39  ;;  %v794_v11 = vmul.f32 %v3782_v0, %v786_v30 }
  0xc0   :  { %815 = vmatpush.msrb.mxu0 %v793_v40  ;;  %835 = vmatpush.msrb.mxu1 %v794_v11 }
  0xc2   :  { %3151 = vmatmul.msk.f32.vlgmr.msrb.gmra.mxu0 %vm90_vm2, %v44_v13  ;;  %3152 = vmatmul.msk.f32.vlgmr.msrb.gmra.mxu1 %vm90_vm2, %v44_v13 }
  0xc4   :  { %v891_v1 = vpop.permute.xlu0 %890  ;;  %v887_v45 = vpop.permute.xlu1 %886 }
  0xc5   :  { %v896_v46 = vsel %vm4478_vm8, %v891_v1, %v885_v29  ;;  %v893_v47 = vsel %vm4478_vm8, %v889_v43, %v891_v1  ;;  %v894_v48 = vsel %vm4478_vm8, %v887_v45, %v889_v43  ;;  %v895_v49 = vsel %vm4478_vm8, %v885_v29, %v887_v45 }
  0xc6   :  { %v904_v53 = vmul.f32 %v3796_v12, %v896_v46  ;;  %v903_v57 = vmul.f32 %v3803_v42, %v893_v47  ;;  %v901_v58 = vmul.f32 %v3808_v44, %v895_v49  ;;  %v902_v59 = vmul.f32 %v3813_v3, %v894_v48 }
  0xc8   :  { %923 = vmatpush.msra.mxu0 %v901_v58  ;;  %943 = vmatpush.msra.mxu1 %v902_v59 }
  0xc9   :  { %963 = vmatpush.msra.mxu2 %v903_v57  ;;  %983 = vmatpush.msra.mxu3 %v904_v53 }
  0xca   :  { %3155 = vmatmul.msk.f32.vlgmr.msra.gmra.mxu0 %vm90_vm2, %v45_v60  ;;  %3156 = vmatmul.msk.f32.vlgmr.msra.gmra.mxu1 %vm90_vm2, %v45_v60 }
  0xcb   :  { %3157 = vmatmul.msk.f32.vlgmr.msra.gmra.mxu2 %vm90_vm2, %v45_v60  ;;  %3158 = vmatmul.msk.f32.vlgmr.msra.gmra.mxu3 %vm90_vm2, %v45_v60 }
  0xff   :  { %v131_v62 = vpop.f32.mrf.mxu1 }
 0x101   :  { %v111_v61 = vpop.f32.mrf.mxu0 }
 0x105   :  { %v151_v5 = vpop.f32.mrf.mxu2 }
 0x106   :  { %v171_v6 = vpop.f32.mrf.mxu3 }
 0x108   :  { %v214_v9 = vpop.f32.mrf.mxu1 }
 0x109   :  { %v194_v7 = vpop.f32.mrf.mxu0  ;;  %v215_v57 = vadd.f32 %v214_v9, %v131_v62 }
 0x10a   :  { %v195_v53 = vadd.f32 %v194_v7, %v111_v61 }
 0x10d   :  { %v234_v21 = vpop.f32.mrf.mxu2 }
 0x10e   :  { %v254_v22 = vpop.f32.mrf.mxu3  ;;  %v235_v56 = vadd.f32 %v234_v21, %v151_v5 }
 0x10f   :  { %v255_v42 = vadd.f32 %v254_v22, %v171_v6 }
 0x110   :  { %v318_v14 = vpop.f32.mrf.mxu1 }
 0x111   :  { %v298_v25 = vpop.f32.mrf.mxu0  ;;  %v362_v58 = vadd.f32 %v318_v14, %v215_v57 }
 0x112   :  { %v361_v59 = vadd.f32 %v298_v25, %v195_v53 }
 0x115   :  { %v338_v26 = vpop.f32.mrf.mxu2 }
 0x116   :  { %v358_v27 = vpop.f32.mrf.mxu3  ;;  %v363_v41 = vadd.f32 %v338_v26, %v235_v56 }
 0x117   :  { %v364_v38 = vadd.f32 %v358_v27, %v255_v42 }
 0x11e   :  { %v446_v13 = vpop.f32.mrf.mxu2  ;;  %v466_v28 = vpop.f32.mrf.mxu3 }
 0x11f   :  { %v406_v29 = vpop.f32.mrf.mxu0  ;;  %v426_v30 = vpop.f32.mrf.mxu1  ;;  %v471_v61 = vadd.f32 %v446_v13, %v363_v41  ;;  %v472_v62 = vadd.f32 %v466_v28, %v364_v38 }
 0x120   :  { %v469_v44 = vadd.f32 %v406_v29, %v361_v59  ;;  %v470_v12 = vadd.f32 %v426_v30, %v362_v58 }
 0x126   :  { %v533_v11 = vpop.f32.mrf.mxu2  ;;  %v553_v43 = vpop.f32.mrf.mxu3 }
 0x127   :  { %v493_v39 = vpop.f32.mrf.mxu0  ;;  %v513_v40 = vpop.f32.mrf.mxu1  ;;  %v558_v29 = vadd.f32 %v533_v11, %v471_v61  ;;  %v559_v30 = vadd.f32 %v553_v43, %v472_v62 }
 0x128   :  { %v556_v8 = vadd.f32 %v493_v39, %v469_v44  ;;  %v557_v2 = vadd.f32 %v513_v40, %v470_v12 }
 0x12e   :  { %v641_v46 = vpop.f32.mrf.mxu2  ;;  %v661_v47 = vpop.f32.mrf.mxu3 }
 0x12f   :  { %v601_v1 = vpop.f32.mrf.mxu0  ;;  %v621_v45 = vpop.f32.mrf.mxu1 }
 0x130   :  { %v664_v55 = vadd.f32 %v601_v1, %v556_v8  ;;  %v665_v54 = vadd.f32 %v621_v45, %v557_v2  ;;  %v666_v8 = vadd.f32 %v641_v46, %v558_v29  ;;  %v667_v2 = vadd.f32 %v661_v47, %v559_v30 }
 0x136   :  { %v749_v60 = vpop.f32.mrf.mxu2  ;;  %v769_v3 = vpop.f32.mrf.mxu3 }
 0x137   :  { %v709_v48 = vpop.f32.mrf.mxu0  ;;  %v729_v49 = vpop.f32.mrf.mxu1  ;;  %v774_v41 = vadd.f32 %v749_v60, %v666_v8 }
 0x138   :  { %v772_v33 = vadd.f32 %v709_v48, %v664_v55  ;;  %v773_v31 = vadd.f32 %v729_v49, %v665_v54  ;;  %v775_v55 = vadd.f32 %v769_v3, %v667_v2 }
 0x13e   :  { %v857_v7 = vpop.f32.mrf.mxu2  ;;  %v877_v9 = vpop.f32.mrf.mxu3 }
 0x13f   :  { %v817_v15 = vpop.f32.mrf.mxu0  ;;  %v837_v0 = vpop.f32.mrf.mxu1 }
 0x140   :  { %v880_v25 = vadd.f32 %v817_v15, %v772_v33  ;;  %v881_v14 = vadd.f32 %v837_v0, %v773_v31  ;;  %v882_v31 = vadd.f32 %v857_v7, %v774_v41  ;;  %v883_v33 = vadd.f32 %v877_v9, %v775_v55 }
 0x147   :  { %v925_v6 = vpop.f32.mrf.mxu0  ;;  %v945_v22 = vpop.f32.mrf.mxu1 }
 0x148   :  { %v3834_v53 = vadd.f32 %v925_v6, %v880_v25  ;;  %v3836_v12 = vadd.f32 %v945_v22, %v881_v14 }
 0x14a   :  { %992 = vst [vmem:[#allocation4] sm:$0xff] %v3834_v53  ;;  %v3159_v54 = vmul.f32 -1.442695, %v3834_v53  ;;  %v3160_v38 = vmul.f32 -1.442695, %v3836_v12 }
 0x14b   :  { %993 = vst [vmem:[#allocation4 + $0x8] sm:$0xff] %v3836_v12 }
 0x14c   :  { %3262 = vpow2.f32 %v3159_v54 }
 0x14d   :  { %3264 = vpow2.f32 %v3160_v38 }
 0x14e   :  { %v965_v56 = vpop.f32.mrf.mxu2  ;;  %v985_v15 = vpop.f32.mrf.mxu3 }
 0x14f   :  { %v3842_v0 = vadd.f32 %v965_v56, %v882_v31  ;;  %v3844_v42 = vadd.f32 %v985_v15, %v883_v33 }
 0x151   :  { %994 = vst [vmem:[#allocation4 + $0x10] sm:$0xff] %v3842_v0  ;;  %v3161_v44 = vmul.f32 -1.442695, %v3842_v0  ;;  %v3162_v5 = vmul.f32 -1.442695, %v3844_v42 }
 0x152   :  { %v3263_v21 = vpop.eup %3262  ;;  %995 = vst [vmem:[#allocation4 + $0x18] sm:$0xff] %v3844_v42 }
 0x153   :  { %v3265_v3 = vpop.eup %3264  ;;  %v3850_v26 = vadd.f32 1.0, %v3263_v21  ;;  %3266 = vpow2.f32 %v3161_v44 }
 0x154   :  { %v1009_v27 = vadd.f32 1.0, %v3265_v3  ;;  %3268 = vpow2.f32 %v3162_v5 }
 0x155   :  { %3270 = vrcp.f32 %v3850_v26  ;;  %v1023_v7 = vand.u32 2147483648, %v3850_v26  ;;  %vm1017_vm15 = vweird.f32 %v3850_v26  ;;  %v1021_v41 = vand.u32 2147483647, %v3850_v26 }
 0x156   :  { %3272 = vrcp.f32 %v1009_v27  ;;  %v1036_v48 = vand.u32 2147483647, %v1009_v27  ;;  %v1038_v49 = vand.u32 2147483648, %v1009_v27  ;;  %vm1032_vm10 = vweird.f32 %v1009_v27 }
 0x157   :  { %v1024_v44 = vor.u32 1.1754944e-38, %v1023_v7  ;;  %vm1022_vm8 = vcmp.eq.f32.partialorder %v1021_v41, 8.507059e+37 }
 0x158   :  { %vm1037_vm12 = vcmp.eq.f32.partialorder %v1036_v48, 8.507059e+37  ;;  %v1039_v9 = vor.u32 1.1754944e-38, %v1038_v49 }
 0x159   :  { %v3267_v13 = vpop.eup %3266 }
 0x15a   :  { %v3269_v28 = vpop.eup %3268  ;;  %v1010_v39 = vadd.f32 1.0, %v3267_v13 }
 0x15b   :  { %v3271_v40 = vpop.eup %3270  ;;  %v1011_v11 = vadd.f32 1.0, %v3269_v28 }
 0x15c   :  { %v3273_v43 = vpop.eup %3272  ;;  %v1013_v1 = vmul.f32 %v3271_v40, %v3850_v26  ;;  %3274 = vrcp.f32 %v1010_v39  ;;  %vm1018_vm13 = vweird.f32 %v3271_v40  ;;  %v1051_v22 = vand.u32 2147483647, %v1010_v39 }
 0x15d   :  { %v1028_v45 = vmul.f32 %v3273_v43, %v1009_v27  ;;  %3276 = vrcp.f32 %v1011_v11  ;;  %vm1033_vm9 = vweird.f32 %v3273_v43  ;;  %v1053_v8 = vand.u32 2147483648, %v1010_v39 }
 0x15e   :  { %v1014_v46 = vsub.f32 1.0, %v1013_v1  ;;  %vm1034_vm11 = vmor %vm1032_vm10, %vm1033_vm9  ;;  %vm1047_vm9 = vweird.f32 %v1010_v39  ;;  %v1068_v55 = vand.u32 2147483648, %v1011_v11  ;;  %v1066_v15 = vand.u32 2147483647, %v1011_v11 }
 0x15f   :  { %v1029_v47 = vsub.f32 1.0, %v1028_v45  ;;  %vm3861_vm10 = vmor %vm1017_vm15, %vm1018_vm13  ;;  %v1054_v5 = vor.u32 1.1754944e-38, %v1053_v8  ;;  %vm1052_vm13 = vcmp.eq.f32.partialorder %v1051_v22, 8.507059e+37  ;;  %vm1062_vm15 = vweird.f32 %v1011_v11  ;;  %v1077_v45 = vld [vmem:[%s4446_s2 + $0x8] sm:$0xff] }
 0x160   :  { %v1015_v59 = vmul.f32 %v3271_v40, %v1014_v46  ;;  %v1069_v27 = vor.u32 1.1754944e-38, %v1068_v55  ;;  %vm1067_vm6 = vcmp.eq.f32.partialorder %v1066_v15, 8.507059e+37 }
 0x161   :  { %v1030_v57 = vmul.f32 %v3273_v43, %v1029_v47 }
 0x162   :  { %v3275_v58 = vpop.eup %3274  ;;  %v1016_v30 = vadd.f32 %v3271_v40, %v1015_v59 }
 0x163   :  { %v1031_v60 = vadd.f32 %v3273_v43, %v1030_v57  ;;  %v1043_v61 = vmul.f32 %v3275_v58, %v1010_v39  ;;  %v3277_v62 = vpop.eup %3276  ;;  %vm1048_vm14 = vweird.f32 %v3275_v58 }
 0x164   :  { %v1058_v29 = vmul.f32 %v3277_v62, %v1011_v11 }
 0x165   :  { %v1035_v25 = vsel %vm1034_vm11, %v3273_v43, %v1031_v60  ;;  %v1044_v14 = vsub.f32 1.0, %v1043_v61  ;;  %vm1063_vm11 = vweird.f32 %v3277_v62 }
 0x166   :  { %v1040_v6 = vsel %vm1037_vm12, %v1039_v9, %v1035_v25  ;;  %v1059_v38 = vsub.f32 1.0, %v1058_v29  ;;  %vm1049_vm12 = vmor %vm1047_vm9, %vm1048_vm14  ;;  %vm4511_vm9 = vcmp.lt.s32.totalorder %v3531_v10, 112 }
 0x167   :  { %v3856_v2 = vmul.f32 %v1040_v6, %v3836_v12  ;;  %v1045_v54 = vmul.f32 %v3275_v58, %v1044_v14  ;;  %v1020_v12 = vsel %vm3861_vm10, %v3271_v40, %v1016_v30  ;;  %vm1064_vm7 = vmor %vm1062_vm15, %vm1063_vm11 }
 0x168   :  { %v1060_v56 = vmul.f32 %v3277_v62, %v1059_v38  ;;  %v1025_v13 = vsel %vm1022_vm8, %v1024_v44, %v1020_v12  ;;  %vm4513_vm10 = vmmov %vm4511_vm9 }
 0x169   :  { %v1046_v33 = vadd.f32 %v3275_v58, %v1045_v54  ;;  %1285 = vrot.lane.b32.xlu1 %v3856_v2, %s3396_s11  ;;  %1087 = vrot.lane.b32.xlu0 %v3856_v2, %s3395_s29  ;;  %v3882_v1 = vmul.f32 %v1025_v13, %v3834_v53  ;;  %vm4514_vm11 = vmmov %vm4511_vm9 }
 0x16a   :  { %1103 = vrot.lane.b32.xlu2 %v3856_v2, %s3394_s28  ;;  %v1061_v3 = vadd.f32 %v3277_v62, %v1060_v56  ;;  %v1076_v56 = vld [vmem:[%s4446_s2] sm:$0xff] }
 0x16b   :  { %v1050_v21 = vsel %vm1049_vm12, %v3275_v58, %v1046_v33  ;;  %vm4515_vm12 = vmmov %vm4511_vm9 }
 0x16c   :  { %v1055_v26 = vsel %vm1052_vm13, %v1054_v5, %v1050_v21  ;;  %v1065_v28 = vsel %vm1064_vm7, %v3277_v62, %v1061_v3  ;;  %vm4519_vm13 = vcmp.lt.s32.totalorder %v3531_v10, 111 }
 0x16d   :  { %v1070_v39 = vsel %vm1067_vm6, %v1069_v27, %v1065_v28  ;;  %v3876_v40 = vmul.f32 %v1055_v26, %v3842_v0  ;;  %vm4503_vm6 = vcmp.lt.s32.totalorder %v3531_v10, 113  ;;  %vm4520_vm15 = vmmov %vm4519_vm13 }
 0x16e   :  { %v3879_v43 = vmul.f32 %v1070_v39, %v3844_v42  ;;  %vm4504_vm7 = vmmov %vm4503_vm6 }
 0x16f   :  { %vm4505_vm8 = vmmov %vm4503_vm6 }
 0x170   :  { %vm4506_vm14 = vmmov %vm4503_vm6 }
 0x171   :  { %1107 = vrot.lane.b32.xlu1 %v3879_v43, %s3394_s28  ;;  %1105 = vrot.lane.b32.xlu0 %v3876_v40, %s3394_s28 }
 0x172   :  { %1101 = vrot.lane.b32.xlu2 %v3882_v1, %s3394_s28 }
 0x179   :  { %1089 = vrot.lane.b32.xlu1 %v3876_v40, %s3395_s29  ;;  %1085 = vrot.lane.b32.xlu0 %v3882_v1, %s3395_s29 }
 0x17a   :  { %1388 = vrot.lane.b32.xlu2 %v3856_v2, %s3397_s12 }
 0x181   :  { %1283 = vrot.lane.b32.xlu1 %v3882_v1, %s3396_s11  ;;  %1289 = vrot.lane.b32.xlu0 %v3879_v43, %s3396_s11 }
 0x182   :  { %1091 = vrot.lane.b32.xlu2 %v3879_v43, %s3395_s29 }
 0x189   :  { %1392 = vrot.lane.b32.xlu1 %v3879_v43, %s3397_s12  ;;  %1390 = vrot.lane.b32.xlu0 %v3876_v40, %s3397_s12 }
 0x18a   :  { %1287 = vrot.lane.b32.xlu2 %v3876_v40, %s3396_s11 }
 0x191   :  { %1679 = vrot.lane.b32.xlu1 %v3882_v1, %s3399_s14  ;;  %1576 = vrot.lane.b32.xlu0 %v3882_v1, %s3398_s13 }
 0x192   :  { %1386 = vrot.lane.b32.xlu2 %v3882_v1, %s3397_s12 }
 0x199   :  { %1580 = vrot.lane.b32.xlu1 %v3876_v40, %s3398_s13  ;;  %1578 = vrot.lane.b32.xlu0 %v3856_v2, %s3398_s13 }
 0x19a   :  { %1782 = vrot.lane.b32.xlu2 %v3882_v1, %s3400_s15 }
 0x1a1   :  { %1681 = vrot.lane.b32.xlu1 %v3856_v2, %s3399_s14  ;;  %1685 = vrot.lane.b32.xlu0 %v3879_v43, %s3399_s14 }
 0x1a2   :  { %1582 = vrot.lane.b32.xlu2 %v3879_v43, %s3398_s13 }
 0x1a9   :  { %1788 = vrot.lane.b32.xlu1 %v3879_v43, %s3400_s15  ;;  %1786 = vrot.lane.b32.xlu0 %v3876_v40, %s3400_s15 }
 0x1aa   :  { %1683 = vrot.lane.b32.xlu2 %v3876_v40, %s3399_s14 }
 0x1b1   :  { %1889 = vrot.lane.b32.xlu1 %v3876_v40, %s3401_s16  ;;  %1885 = vrot.lane.b32.xlu0 %v3882_v1, %s3401_s16 }
 0x1b2   :  { %1784 = vrot.lane.b32.xlu2 %v3856_v2, %s3400_s15 }
 0x1b9   :  { %1887 = vrot.lane.b32.xlu0 %v3856_v2, %s3401_s16 }
 0x1ba   :  { %1891 = vrot.lane.b32.xlu2 %v3879_v43, %s3401_s16 }
 0x1c4   :  { %v1104_v53 = vpop.permute.xlu2 %1103 }
 0x1cc   :  { %v1102_v0 = vpop.permute.xlu2 %1101 }
 0x1cd   :  { %v1111_v42 = vsel %vm77_vm1, %v1102_v0, %v1104_v53 }
 0x1ce   :  { %v1114_v11 = vmul.f32 %v1111_v42, %v3559_v17 }
 0x1d0   :  { %1155 = vmatpush.msrb.mxu1 %v1114_v11 }
 0x1d1   :  { %3164 = vmatmul.msk.f32.vlgmr.msrb.gmra.mxu1 %vm90_vm2, %v1077_v45 }
 0x1d4   :  { %v3949_v46 = vpop.permute.xlu2 %1388 }
 0x1db   :  { %v1286_v47 = vpop.permute.xlu1 %1285  ;;  %v1088_v48 = vpop.permute.xlu0 %1087 }
 0x1dc   :  { %v1092_v49 = vpop.permute.xlu2 %1091 }
 0x1e3   :  { %v1108_v57 = vpop.permute.xlu1 %1107  ;;  %v1106_v58 = vpop.permute.xlu0 %1105 }
 0x1e4   :  { %v1112_v59 = vsel %vm77_vm1, %v1108_v57, %v1102_v0  ;;  %v1109_v60 = vsel %vm77_vm1, %v1106_v58, %v1108_v57  ;;  %v1110_v61 = vsel %vm77_vm1, %v1104_v53, %v1106_v58  ;;  %v1288_v62 = vpop.permute.xlu2 %1287  ;;  %v1078_v0 = vld [vmem:[%s4446_s2 + $0x10] sm:$0xff] }
 0x1e5   :  { %v1113_v7 = vmul.f32 %v1112_v59, %v3556_v16  ;;  %v1115_v9 = vmul.f32 %v1110_v61, %v3562_v18  ;;  %v1116_v25 = vmul.f32 %v1109_v60, %v3565_v19  ;;  %v1292_v33 = vsel %vm265_vm3, %v1286_v47, %v1288_v62 }
 0x1e6   :  { %v1297_v15 = vmul.f32 %v1292_v33, %v3626_v50 }
 0x1e7   :  { %1135 = vmatpush.msrb.mxu0 %v1113_v7  ;;  %1175 = vmatpush.msrb.mxu2 %v1115_v9 }
 0x1e8   :  { %1195 = vmatpush.msrb.mxu3 %v1116_v25  ;;  %3163 = vmatmul.msk.f32.vlgmr.msrb.gmra.mxu0 %vm90_vm2, %v1077_v45 }
 0x1e9   :  { %3165 = vmatmul.msk.f32.vlgmr.msrb.gmra.mxu2 %vm90_vm2, %v1077_v45  ;;  %3166 = vmatmul.msk.f32.vlgmr.msrb.gmra.mxu3 %vm90_vm2, %v1077_v45 }
 0x1eb   :  { %v1090_v14 = vpop.permute.xlu1 %1089  ;;  %v1086_v29 = vpop.permute.xlu0 %1085 }
 0x1ec   :  { %v1093_v30 = vsel %vm56_vm0, %v1090_v14, %v1092_v49  ;;  %v1094_v6 = vsel %vm56_vm0, %v1088_v48, %v1090_v14  ;;  %v1095_v22 = vsel %vm56_vm0, %v1086_v29, %v1088_v48  ;;  %v1096_v8 = vsel %vm56_vm0, %v1092_v49, %v1086_v29  ;;  %v1387_v54 = vpop.permute.xlu2 %1386  ;;  %v4500_v29 = vld [vmem:[#allocation9_spill] sm:$0xff] }
 0x1ed   :  { %v1099_v38 = vmul.f32 %v1094_v6, %v3568_v20  ;;  %v1100_v41 = vmul.f32 %v1093_v30, %v3601_v37  ;;  %v1097_v55 = vmul.f32 %v1096_v8, %v3595_v35  ;;  %v1098_v31 = vmul.f32 %v1095_v22, %v3598_v36  ;;  %v4501_v6 = vld [vmem:[#allocation11_spill] sm:$0xff]  ;;  %v4502_v8 = vld [vmem:[#allocation12_spill] sm:$0xff] }
 0x1ee   :  { %v1396_v12 = vsel %vm373_vm4, %v1387_v54, %v3949_v46 }
 0x1ef   :  { %1218 = vmatpush.msra.mxu0 %v1097_v55  ;;  %1238 = vmatpush.msra.mxu1 %v1098_v31  ;;  %v1399_v53 = vmul.f32 %v1396_v12, %v3677_v24 }
 0x1f0   :  { %1258 = vmatpush.msra.mxu2 %v1099_v38  ;;  %1278 = vmatpush.msra.mxu3 %v1100_v41  ;;  %v1081_v38 = vld [vmem:[%s4446_s2 + $0x28] sm:$0xff] }
 0x1f1   :  { %3167 = vmatmul.msk.f32.vlgmr.msra.gmra.mxu0 %vm90_vm2, %v1076_v56  ;;  %3168 = vmatmul.msk.f32.vlgmr.msra.gmra.mxu1 %vm90_vm2, %v1076_v56 }
 0x1f2   :  { %3169 = vmatmul.msk.f32.vlgmr.msra.gmra.mxu2 %vm90_vm2, %v1076_v56  ;;  %3170 = vmatmul.msk.f32.vlgmr.msra.gmra.mxu3 %vm90_vm2, %v1076_v56 }
 0x1f3   :  { %1357 = vmatpush.msrb.mxu2 %v1297_v15  ;;  %v1284_v44 = vpop.permute.xlu1 %1283  ;;  %v1290_v5 = vpop.permute.xlu0 %1289 }
 0x1f4   :  { %v1293_v21 = vsel %vm265_vm3, %v1284_v44, %v1286_v47  ;;  %v1291_v3 = vsel %vm265_vm3, %v1288_v62, %v1290_v5  ;;  %v1294_v26 = vsel %vm265_vm3, %v1290_v5, %v1284_v44  ;;  %v3994_v27 = vpop.permute.xlu2 %1782  ;;  %v4507_v44 = vld [vmem:[#allocation13_spill] sm:$0xff] }
 0x1f5   :  { %v1296_v13 = vmul.f32 %v1293_v21, %v3590_v34  ;;  %v1295_v28 = vmul.f32 %v1294_v26, %v3629_v51  ;;  %v1298_v39 = vmul.f32 %v1291_v3, %v3632_v52  ;;  %v4508_v21 = vld [vmem:[#allocation14_spill] sm:$0xff]  ;;  %v4509_v26 = vld [vmem:[#allocation15_spill] sm:$0xff] }
 0x1f7   :  { %1317 = vmatpush.msrb.mxu0 %v1295_v28  ;;  %1337 = vmatpush.msrb.mxu1 %v1296_v13  ;;  %v4510_v28 = vld [vmem:[#allocation16_spill] sm:$0xff] }
 0x1f8   :  { %1377 = vmatpush.msrb.mxu3 %v1298_v39 }
 0x1f9   :  { %1440 = vmatpush.msra.mxu1 %v1399_v53  ;;  %3171 = vmatmul.msk.f32.vlgmr.msrb.gmra.mxu0 %vm90_vm2, %v1078_v0 }
 0x1fa   :  { %3172 = vmatmul.msk.f32.vlgmr.msrb.gmra.mxu1 %vm90_vm2, %v1078_v0  ;;  %3173 = vmatmul.msk.f32.vlgmr.msrb.gmra.mxu2 %vm90_vm2, %v1078_v0 }
 0x1fb   :  { %3174 = vmatmul.msk.f32.vlgmr.msrb.gmra.mxu3 %vm90_vm2, %v1078_v0  ;;  %1527 = vmatpush.msrb.mxu1 %v3856_v2  ;;  %v1393_v42 = vpop.permute.xlu1 %1392  ;;  %v1391_v11 = vpop.permute.xlu0 %1390  ;;  %v1079_v2 = vld [vmem:[%s4446_s2 + $0x18] sm:$0xff]  ;;  %v1082_v0 = vld [vmem:[%s4446_s2 + $0x30] sm:$0xff] }
 0x1fc   :  { %v1397_v45 = vsel %vm373_vm4, %v1393_v42, %v1387_v54  ;;  %v1394_v47 = vsel %vm373_vm4, %v1391_v11, %v1393_v42  ;;  %v1395_v48 = vsel %vm373_vm4, %v3949_v46, %v1391_v11  ;;  %v1583_v59 = vpop.permute.xlu2 %1582  ;;  %v4512_v42 = vld [vmem:[#allocation19_spill] sm:$0xff] }
 0x1fd   :  { %v1398_v49 = vmul.f32 %v1397_v45, %v3674_v23  ;;  %v1400_v57 = vmul.f32 %v1395_v48, %v3653_v63  ;;  %v1401_v58 = vmul.f32 %v1394_v47, %v3656_v4 }
 0x1ff   :  { %1420 = vmatpush.msra.mxu0 %v1398_v49  ;;  %1460 = vmatpush.msra.mxu2 %v1400_v57 }
 0x200   :  { %1480 = vmatpush.msra.mxu3 %v1401_v58  ;;  %v4516_v58 = vld [vmem:[#allocation17_spill] sm:$0xff] }
 0x201   :  { %1507 = vmatpush.msrb.mxu0 %v3882_v1  ;;  %1547 = vmatpush.msrb.mxu2 %v3876_v40  ;;  %v1080_v1 = vld [vmem:[%s4446_s2 + $0x20] sm:$0xff] }
 0x202   :  { %3175 = vmatmul.msk.f32.vlgmr.msra.gmra.mxu0 %vm90_vm2, %v1079_v2  ;;  %3176 = vmatmul.msk.f32.vlgmr.msra.gmra.mxu1 %vm90_vm2, %v1079_v2 }
 0x203   :  { %3177 = vmatmul.msk.f32.vlgmr.msra.gmra.mxu2 %vm90_vm2, %v1079_v2  ;;  %3178 = vmatmul.msk.f32.vlgmr.msra.gmra.mxu3 %vm90_vm2, %v1079_v2  ;;  %v1680_v46 = vpop.permute.xlu1 %1679  ;;  %v1577_v60 = vpop.permute.xlu0 %1576  ;;  %v4517_v2 = vld [vmem:[#allocation20_spill] sm:$0xff] }
 0x204   :  { %1567 = vmatpush.msrb.mxu3 %v3879_v43  ;;  %v1587_v61 = vsel %vm568_vm5, %v1583_v59, %v1577_v60  ;;  %v1684_v7 = vpop.permute.xlu2 %1683 }
 0x205   :  { %v1591_v62 = vmul.f32 %v1587_v61, %v3699_v32 }
 0x207   :  { %1670 = vmatpush.msra.mxu3 %v1591_v62  ;;  %v1083_v62 = vld [vmem:[%s4446_s2 + $0x38] sm:$0xff] }
 0x20a   :  { %3179 = vmatmul.msk.f32.vlgmr.msrb.gmra.mxu0 %vm90_vm2, %v1080_v1  ;;  %3180 = vmatmul.msk.f32.vlgmr.msrb.gmra.mxu1 %vm90_vm2, %v1080_v1 }
 0x20b   :  { %3181 = vmatmul.msk.f32.vlgmr.msrb.gmra.mxu2 %vm90_vm2, %v1080_v1  ;;  %3182 = vmatmul.msk.f32.vlgmr.msrb.gmra.mxu3 %vm90_vm2, %v1080_v1  ;;  %v1581_v40 = vpop.permute.xlu1 %1580  ;;  %v1579_v43 = vpop.permute.xlu0 %1578 }
 0x20c   :  { %v1584_v9 = vsel %vm568_vm5, %v1581_v40, %v1583_v59  ;;  %v1585_v25 = vsel %vm568_vm5, %v1579_v43, %v1581_v40  ;;  %v1586_v14 = vsel %vm568_vm5, %v1577_v60, %v1579_v43  ;;  %v1785_v41 = vpop.permute.xlu2 %1784  ;;  %v4518_v60 = vld [vmem:[#allocation18_spill] sm:$0xff] }
 0x20d   :  { %v1590_v30 = vmul.f32 %v1584_v9, %v4500_v29  ;;  %v1588_v22 = vmul.f32 %v1586_v14, %v4501_v6  ;;  %v1589_v54 = vmul.f32 %v1585_v25, %v4502_v8  ;;  %v1792_v53 = vsel %vm4511_vm9, %v3994_v27, %v1785_v41  ;;  %v4521_v9 = vld [vmem:[#allocation22_spill] sm:$0xff]  ;;  %v4522_v14 = vld [vmem:[#allocation21_spill] sm:$0xff] }
 0x20e   :  { %v1794_v11 = vmul.f32 %v1792_v53, %v4512_v42 }
 0x20f   :  { %1610 = vmatpush.msra.mxu0 %v1588_v22  ;;  %1630 = vmatpush.msra.mxu1 %v1589_v54  ;;  %v1084_v22 = vld [vmem:[%s4446_s2 + $0x40] sm:$0xff] }
 0x210   :  { %1650 = vmatpush.msra.mxu2 %v1590_v30 }
 0x212   :  { %3183 = vmatmul.msk.f32.vlgmr.msra.gmra.mxu0 %vm90_vm2, %v1081_v38  ;;  %3184 = vmatmul.msk.f32.vlgmr.msra.gmra.mxu1 %vm90_vm2, %v1081_v38 }
 0x213   :  { %3185 = vmatmul.msk.f32.vlgmr.msra.gmra.mxu2 %vm90_vm2, %v1081_v38  ;;  %3186 = vmatmul.msk.f32.vlgmr.msra.gmra.mxu3 %vm90_vm2, %v1081_v38  ;;  %v1682_v55 = vpop.permute.xlu1 %1681  ;;  %v1686_v31 = vpop.permute.xlu0 %1685 }
 0x214   :  { %v1688_v33 = vsel %vm4503_vm6, %v1682_v55, %v1684_v7  ;;  %v1689_v56 = vsel %vm4504_vm7, %v1680_v46, %v1682_v55  ;;  %v1687_v15 = vsel %vm4505_vm8, %v1684_v7, %v1686_v31  ;;  %v1690_v12 = vsel %vm4506_vm14, %v1686_v31, %v1680_v46  ;;  %vm4523_vm6 = vmmov %vm4519_vm13  ;;  %v4525_v55 = vld [vmem:[#allocation23_spill] sm:$0xff] }
 0x215   :  { %v1691_v5 = vmul.f32 %v1689_v56, %v4507_v44  ;;  %v1692_v3 = vmul.f32 %v1688_v33, %v4508_v21  ;;  %v1693_v13 = vmul.f32 %v1687_v15, %v4509_v26  ;;  %v1694_v39 = vmul.f32 %v1690_v12, %v4510_v28  ;;  %vm4524_vm7 = vmmov %vm4523_vm6  ;;  %v4526_v33 = vld [vmem:[#allocation24_spill] sm:$0xff] }
 0x217   :  { %1713 = vmatpush.msrb.mxu0 %v1691_v5  ;;  %1733 = vmatpush.msrb.mxu1 %v1692_v3 }
 0x218   :  { %1753 = vmatpush.msrb.mxu2 %v1693_v13  ;;  %1773 = vmatpush.msrb.mxu3 %v1694_v39 }
 0x219   :  { %1816 = vmatpush.msra.mxu0 %v1794_v11 }
 0x21a   :  { %3187 = vmatmul.msk.f32.vlgmr.msrb.gmra.mxu0 %vm90_vm2, %v1082_v0  ;;  %3188 = vmatmul.msk.f32.vlgmr.msrb.gmra.mxu1 %vm90_vm2, %v1082_v0 }
 0x21b   :  { %3189 = vmatmul.msk.f32.vlgmr.msrb.gmra.mxu2 %vm90_vm2, %v1082_v0  ;;  %3190 = vmatmul.msk.f32.vlgmr.msrb.gmra.mxu3 %vm90_vm2, %v1082_v0  ;;  %v1789_v45 = vpop.permute.xlu1 %1788  ;;  %v1787_v47 = vpop.permute.xlu0 %1786 }
 0x21c   :  { %v1793_v48 = vsel %vm4513_vm10, %v1789_v45, %v3994_v27  ;;  %v1790_v49 = vsel %vm4514_vm11, %v1787_v47, %v1789_v45  ;;  %v1791_v57 = vsel %vm4515_vm12, %v1785_v41, %v1787_v47  ;;  %v1892_v27 = vpop.permute.xlu2 %1891 }
 0x21d   :  { %v1797_v59 = vmul.f32 %v1793_v48, %v4516_v58  ;;  %v1795_v46 = vmul.f32 %v1791_v57, %v4517_v2  ;;  %v1796_v61 = vmul.f32 %v1790_v49, %v4518_v60 }
 0x21f   :  { %1836 = vmatpush.msra.mxu1 %v1795_v46  ;;  %1856 = vmatpush.msra.mxu2 %v1796_v61 }
 0x220   :  { %1876 = vmatpush.msra.mxu3 %v1797_v59 }
 0x222   :  { %3191 = vmatmul.msk.f32.vlgmr.msra.gmra.mxu0 %vm90_vm2, %v1083_v62  ;;  %3192 = vmatmul.msk.f32.vlgmr.msra.gmra.mxu1 %vm90_vm2, %v1083_v62 }
 0x223   :  { %3193 = vmatmul.msk.f32.vlgmr.msra.gmra.mxu2 %vm90_vm2, %v1083_v62  ;;  %3194 = vmatmul.msk.f32.vlgmr.msra.gmra.mxu3 %vm90_vm2, %v1083_v62  ;;  %v1890_v1 = vpop.permute.xlu1 %1889  ;;  %v1886_v7 = vpop.permute.xlu0 %1885 }
 0x224   :  { %v1893_v40 = vsel %vm4519_vm13, %v1890_v1, %v1892_v27  ;;  %v1896_v43 = vsel %vm4520_vm15, %v1892_v27, %v1886_v7 }
 0x225   :  { %v1899_v25 = vmul.f32 %v4521_v9, %v1893_v40  ;;  %v1900_v30 = vmul.f32 %v4522_v14, %v1896_v43 }
 0x227   :  { %1959 = vmatpush.msrb.mxu2 %v1899_v25  ;;  %1979 = vmatpush.msrb.mxu3 %v1900_v30 }
 0x22b   :  { %3197 = vmatmul.msk.f32.vlgmr.msrb.gmra.mxu2 %vm90_vm2, %v1084_v22  ;;  %3198 = vmatmul.msk.f32.vlgmr.msrb.gmra.mxu3 %vm90_vm2, %v1084_v22  ;;  %v1888_v54 = vpop.permute.xlu0 %1887 }
 0x22c   :  { %v1894_v38 = vsel %vm4523_vm6, %v1888_v54, %v1890_v1  ;;  %v1895_v41 = vsel %vm4524_vm7, %v1886_v7, %v1888_v54 }
 0x22d   :  { %v1897_v31 = vmul.f32 %v4525_v55, %v1895_v41  ;;  %v1898_v56 = vmul.f32 %v4526_v33, %v1894_v38 }
 0x22f   :  { %1919 = vmatpush.msrb.mxu0 %v1897_v31  ;;  %1939 = vmatpush.msrb.mxu1 %v1898_v56 }
 0x230   :  { %3195 = vmatmul.msk.f32.vlgmr.msrb.gmra.mxu0 %vm90_vm2, %v1084_v22  ;;  %3196 = vmatmul.msk.f32.vlgmr.msrb.gmra.mxu1 %vm90_vm2, %v1084_v22 }
 0x24e   :  { %v1157_v15 = vpop.f32.mrf.mxu1 }
 0x265   :  { %v1137_v12 = vpop.f32.mrf.mxu0 }
 0x26c   :  { %v1177_v5 = vpop.f32.mrf.mxu2  ;;  %v1197_v3 = vpop.f32.mrf.mxu3 }
 0x26e   :  { %v1220_v13 = vpop.f32.mrf.mxu0  ;;  %v1240_v39 = vpop.f32.mrf.mxu1 }
 0x26f   :  { %v1221_v55 = vadd.f32 %v1220_v13, %v1137_v12  ;;  %v1241_v31 = vadd.f32 %v1240_v39, %v1157_v15 }
 0x275   :  { %v1260_v53 = vpop.f32.mrf.mxu2  ;;  %v1280_v0 = vpop.f32.mrf.mxu3 }
 0x276   :  { %v1319_v11 = vpop.f32.mrf.mxu0  ;;  %v1261_v25 = vadd.f32 %v1260_v53, %v1177_v5  ;;  %v1281_v38 = vadd.f32 %v1280_v0, %v1197_v3 }
 0x277   :  { %v1339_v45 = vpop.f32.mrf.mxu1  ;;  %v1382_v2 = vadd.f32 %v1319_v11, %v1221_v55 }
 0x278   :  { %v1383_v42 = vadd.f32 %v1339_v45, %v1241_v31 }
 0x27d   :  { %v1359_v47 = vpop.f32.mrf.mxu2 }
 0x27e   :  { %v1379_v48 = vpop.f32.mrf.mxu3  ;;  %v1384_v41 = vadd.f32 %v1359_v47, %v1261_v25 }
 0x27f   :  { %v1422_v49 = vpop.f32.mrf.mxu0  ;;  %v1442_v57 = vpop.f32.mrf.mxu1  ;;  %v1385_v33 = vadd.f32 %v1379_v48, %v1281_v38 }
 0x280   :  { %v1485_v26 = vadd.f32 %v1422_v49, %v1382_v2  ;;  %v1486_v21 = vadd.f32 %v1442_v57, %v1383_v42 }
 0x286   :  { %v1462_v59 = vpop.f32.mrf.mxu2  ;;  %v1482_v46 = vpop.f32.mrf.mxu3 }
 0x287   :  { %v1509_v61 = vpop.f32.mrf.mxu0  ;;  %v1529_v62 = vpop.f32.mrf.mxu1  ;;  %v1487_v56 = vadd.f32 %v1462_v59, %v1384_v41  ;;  %v1488_v60 = vadd.f32 %v1482_v46, %v1385_v33 }
 0x288   :  { %v1572_v44 = vadd.f32 %v1509_v61, %v1485_v26  ;;  %v1573_v8 = vadd.f32 %v1529_v62, %v1486_v21 }
 0x28e   :  { %v1549_v27 = vpop.f32.mrf.mxu2  ;;  %v1569_v1 = vpop.f32.mrf.mxu3 }
 0x28f   :  { %v1612_v7 = vpop.f32.mrf.mxu0  ;;  %v1632_v40 = vpop.f32.mrf.mxu1  ;;  %v1574_v32 = vadd.f32 %v1549_v27, %v1487_v56  ;;  %v1575_v29 = vadd.f32 %v1569_v1, %v1488_v60 }
 0x290   :  { %v1675_v0 = vadd.f32 %v1612_v7, %v1572_v44  ;;  %v1676_v12 = vadd.f32 %v1632_v40, %v1573_v8 }
 0x296   :  { %v1652_v43 = vpop.f32.mrf.mxu2  ;;  %v1672_v9 = vpop.f32.mrf.mxu3 }
 0x297   :  { %v1715_v14 = vpop.f32.mrf.mxu0  ;;  %v1735_v30 = vpop.f32.mrf.mxu1  ;;  %v1677_v6 = vadd.f32 %v1652_v43, %v1574_v32  ;;  %v1678_v3 = vadd.f32 %v1672_v9, %v1575_v29 }
 0x298   :  { %v1778_v39 = vadd.f32 %v1715_v14, %v1675_v0  ;;  %v1779_v11 = vadd.f32 %v1735_v30, %v1676_v12 }
 0x29e   :  { %v1755_v22 = vpop.f32.mrf.mxu2  ;;  %v1775_v54 = vpop.f32.mrf.mxu3 }
 0x29f   :  { %v1818_v5 = vpop.f32.mrf.mxu0  ;;  %v1838_v53 = vpop.f32.mrf.mxu1  ;;  %v1780_v15 = vadd.f32 %v1755_v22, %v1677_v6  ;;  %v1781_v13 = vadd.f32 %v1775_v54, %v1678_v3 }
 0x2a0   :  { %v1881_v2 = vadd.f32 %v1818_v5, %v1778_v39  ;;  %v1882_v42 = vadd.f32 %v1838_v53, %v1779_v11 }
 0x2a6   :  { %v1858_v58 = vpop.f32.mrf.mxu2  ;;  %v1878_v28 = vpop.f32.mrf.mxu3 }
 0x2a7   :  { %v1883_v45 = vadd.f32 %v1858_v58, %v1780_v15  ;;  %v1884_v47 = vadd.f32 %v1878_v28, %v1781_v13 }
 0x2ad   :  { %v1921_v26 = vpop.f32.mrf.mxu0  ;;  %v1941_v21 = vpop.f32.mrf.mxu1 }
 0x2ae   :  { %v1961_v48 = vpop.f32.mrf.mxu2  ;;  %v1981_v49 = vpop.f32.mrf.mxu3  ;;  %v4117_v32 = vadd.f32 %v1921_v26, %v1881_v2  ;;  %v1985_v29 = vadd.f32 %v1941_v21, %v1882_v42 }
 0x2af   :  { %v4113_v57 = vadd.f32 %v1961_v48, %v1883_v45  ;;  %v4115_v60 = vadd.f32 %v1981_v49, %v1884_v47 }
 0x2b0   :  { %v3199_v44 = vmul.f32 -1.442695, %v4117_v32  ;;  %v3200_v28 = vmul.f32 -1.442695, %v1985_v29 }
 0x2b1   :  { %v3201_v6 = vmul.f32 -1.442695, %v4113_v57  ;;  %v3202_v8 = vmul.f32 -1.442695, %v4115_v60 }
 0x2b3   :  { %3278 = vpow2.f32 %v3201_v6 }
 0x2b4   :  { %3280 = vpow2.f32 %v3202_v8 }
 0x2b5   :  { %3282 = vpow2.f32 %v3199_v44 }
 0x2b6   :  { %3284 = vpow2.f32 %v3200_v28 }
 0x2b9   :  { %v3279_v58 = vpop.eup %3278 }
 0x2ba   :  { %v3281_v59 = vpop.eup %3280  ;;  %v4122_v46 = vadd.f32 1.0, %v3279_v58 }
 0x2bb   :  { %v3283_v61 = vpop.eup %3282  ;;  %v2003_v62 = vadd.f32 1.0, %v3281_v59 }
 0x2bc   :  { %v3285_v27 = vpop.eup %3284  ;;  %3286 = vrcp.f32 %v4122_v46  ;;  %v4125_v1 = vadd.f32 1.0, %v3283_v61  ;;  %vm2039_vm14 = vweird.f32 %v4122_v46  ;;  %v2043_v12 = vand.u32 2147483647, %v4122_v46 }
 0x2bd   :  { %3288 = vrcp.f32 %v2003_v62  ;;  %v2001_v7 = vadd.f32 1.0, %v3285_v27  ;;  %v2045_v13 = vand.u32 2147483648, %v4122_v46  ;;  %v2060_v2 = vand.u32 2147483648, %v2003_v62 }
 0x2be   :  { %3290 = vrcp.f32 %v4125_v1  ;;  %vm2054_vm7 = vweird.f32 %v2003_v62  ;;  %v2058_v26 = vand.u32 2147483647, %v2003_v62  ;;  %v2015_v21 = vand.u32 2147483648, %v4125_v1 }
 0x2bf   :  { %3292 = vrcp.f32 %v2001_v7  ;;  %v2028_v33 = vand.u32 2147483647, %v2001_v7  ;;  %v2030_v56 = vand.u32 2147483648, %v2001_v7  ;;  %vm2024_vm9 = vweird.f32 %v2001_v7 }
 0x2c0   :  { %v2013_v44 = vand.u32 2147483647, %v4125_v1  ;;  %v2061_v59 = vor.u32 1.1754944e-38, %v2060_v2  ;;  %v2016_v61 = vor.u32 1.1754944e-38, %v2015_v21 }
 0x2c1   :  { %vm2029_vm12 = vcmp.eq.f32.partialorder %v2028_v33, 8.507059e+37  ;;  %v2031_v39 = vor.u32 1.1754944e-38, %v2030_v56 }
 0x2c2   :  { %v3287_v40 = vpop.eup %3286 }
 0x2c3   :  { %v3289_v43 = vpop.eup %3288  ;;  %v2035_v9 = vmul.f32 %v3287_v40, %v4122_v46  ;;  %vm2040_vm10 = vweird.f32 %v3287_v40 }
 0x2c4   :  { %v2050_v25 = vmul.f32 %v3289_v43, %v2003_v62  ;;  %v3291_v14 = vpop.eup %3290  ;;  %vm2055_vm13 = vweird.f32 %v3289_v43  ;;  %vm4135_vm6 = vmor %vm2039_vm14, %vm2040_vm10  ;;  %vm2044_vm10 = vcmp.eq.f32.partialorder %v2043_v12, 8.507059e+37 }
 0x2c5   :  { %v3293_v30 = vpop.eup %3292  ;;  %v2005_v22 = vmul.f32 %v3291_v14, %v4125_v1  ;;  %v2036_v54 = vsub.f32 1.0, %v2035_v9  ;;  %vm2010_vm15 = vweird.f32 %v3291_v14 }
 0x2c6   :  { %v2051_v38 = vsub.f32 1.0, %v2050_v25  ;;  %v2020_v41 = vmul.f32 %v3293_v30, %v2001_v7  ;;  %vm2025_vm8 = vweird.f32 %v3293_v30 }
 0x2c7   :  { %v2006_v55 = vsub.f32 1.0, %v2005_v22  ;;  %v2037_v5 = vmul.f32 %v3287_v40, %v2036_v54  ;;  %vm2026_vm11 = vmor %vm2024_vm9, %vm2025_vm8  ;;  %vm2009_vm9 = vweird.f32 %v4125_v1  ;;  %v2069_v54 = vld [vmem:[%s4447_s3 + $0x8] sm:$0xff] }
 0x2c8   :  { %v2021_v31 = vsub.f32 1.0, %v2020_v41  ;;  %v2052_v53 = vmul.f32 %v3289_v43, %v2051_v38  ;;  %vm4142_vm8 = vmor %vm2054_vm7, %vm2055_vm13 }
 0x2c9   :  { %v2007_v0 = vmul.f32 %v3291_v14, %v2006_v55  ;;  %v2038_v11 = vadd.f32 %v3287_v40, %v2037_v5  ;;  %vm2011_vm14 = vmor %vm2009_vm9, %vm2010_vm15  ;;  %vm4547_vm15 = vcmp.lt.s32.totalorder %v3531_v10, 111 }
 0x2ca   :  { %v2022_v3 = vmul.f32 %v3293_v30, %v2021_v31  ;;  %v2053_v45 = vadd.f32 %v3289_v43, %v2052_v53 }
 0x2cb   :  { %v2008_v42 = vadd.f32 %v3291_v14, %v2007_v0  ;;  %v2042_v28 = vsel %vm4135_vm6, %v3287_v40, %v2038_v11 }
 0x2cc   :  { %v2023_v15 = vadd.f32 %v3293_v30, %v2022_v3  ;;  %v2057_v58 = vsel %vm4142_vm8, %v3289_v43, %v2053_v45  ;;  %vm4550_vm8 = vmmov %vm4547_vm15 }
 0x2cd   :  { %v2012_v46 = vsel %vm2011_vm14, %v3291_v14, %v2008_v42  ;;  %vm4553_vm9 = vmmov %vm4550_vm8 }
 0x2ce   :  { %v2027_v47 = vsel %vm2026_vm11, %v3293_v30, %v2023_v15  ;;  %vm2059_vm11 = vcmp.eq.f32.partialorder %v2058_v26, 8.507059e+37  ;;  %v2070_v26 = vld [vmem:[%s4447_s3 + $0x10] sm:$0xff]  ;;  %vm4554_vm14 = vmmov %vm4550_vm8 }
 0x2cf   :  { %v2032_v48 = vsel %vm2029_vm12, %v2031_v39, %v2027_v47  ;;  %v2062_v27 = vsel %vm2059_vm11, %v2061_v59, %v2057_v58  ;;  %vm2014_vm12 = vcmp.eq.f32.partialorder %v2013_v44, 8.507059e+37 }
 0x2d0   :  { %v4140_v6 = vmul.f32 %v2032_v48, %v1985_v29  ;;  %v2046_v29 = vor.u32 1.1754944e-38, %v2045_v13  ;;  %v2017_v1 = vsel %vm2014_vm12, %v2016_v61, %v2012_v46  ;;  %v4162_v40 = vmul.f32 %v2062_v27, %v4115_v60  ;;  %v2071_v27 = vld [vmem:[%s4447_s3 + $0x18] sm:$0xff] }
 0x2d1   :  { %v4165_v43 = vmul.f32 %v2017_v1, %v4117_v32 }
 0x2d2   :  { %2277 = vrot.lane.b32.xlu0 %v4140_v6, %s3396_s11  ;;  %2079 = vrot.lane.b32.xlu2 %v4140_v6, %s3395_s29  ;;  %v2047_v62 = vsel %vm2044_vm10, %v2046_v29, %v2042_v28 }
 0x2d3   :  { %2095 = vrot.lane.b32.xlu1 %v4140_v6, %s3394_s28  ;;  %v4159_v7 = vmul.f32 %v2047_v62, %v4113_v57 }
 0x2da   :  { %2099 = vrot.lane.b32.xlu0 %v4162_v40, %s3394_s28  ;;  %2097 = vrot.lane.b32.xlu2 %v4159_v7, %s3394_s28 }
 0x2db   :  { %2093 = vrot.lane.b32.xlu1 %v4165_v43, %s3394_s28  ;;  %s3402_s28 = smov [#allocation4]  }
 0x2e2   :  { %2081 = vrot.lane.b32.xlu0 %v4159_v7, %s3395_s29  ;;  %2077 = vrot.lane.b32.xlu2 %v4165_v43, %s3395_s29 }
 0x2e3   :  { %2380 = vrot.lane.b32.xlu1 %v4140_v6, %s3397_s12 }
 0x2ea   :  { %2275 = vrot.lane.b32.xlu0 %v4165_v43, %s3396_s11  ;;  %2281 = vrot.lane.b32.xlu2 %v4162_v40, %s3396_s11 }
 0x2eb   :  { %2083 = vrot.lane.b32.xlu1 %v4162_v40, %s3395_s29  ;;  %s3092_s29 = sshll.u32 %s3402_s28, 4  ;;  %s3093_s29 = int_to_ptr.vmem [resolvable:$true] %s3092_s29 }
 0x2f2   :  { %2384 = vrot.lane.b32.xlu0 %v4162_v40, %s3397_s12  ;;  %2382 = vrot.lane.b32.xlu2 %v4159_v7, %s3397_s12 }
 0x2f3   :  { %2279 = vrot.lane.b32.xlu1 %v4159_v7, %s3396_s11 }
 0x2fa   :  { %2671 = vrot.lane.b32.xlu0 %v4165_v43, %s3399_s14  ;;  %2568 = vrot.lane.b32.xlu2 %v4165_v43, %s3398_s13 }
 0x2fb   :  { %2378 = vrot.lane.b32.xlu1 %v4165_v43, %s3397_s12 }
 0x302   :  { %2572 = vrot.lane.b32.xlu0 %v4159_v7, %s3398_s13  ;;  %2570 = vrot.lane.b32.xlu2 %v4140_v6, %s3398_s13 }
 0x303   :  { %2774 = vrot.lane.b32.xlu1 %v4165_v43, %s3400_s15 }
 0x30a   :  { %2673 = vrot.lane.b32.xlu0 %v4140_v6, %s3399_s14  ;;  %2677 = vrot.lane.b32.xlu2 %v4162_v40, %s3399_s14 }
 0x30b   :  { %2574 = vrot.lane.b32.xlu1 %v4162_v40, %s3398_s13 }
 0x312   :  { %2780 = vrot.lane.b32.xlu0 %v4162_v40, %s3400_s15  ;;  %2778 = vrot.lane.b32.xlu2 %v4159_v7, %s3400_s15 }
 0x313   :  { %2675 = vrot.lane.b32.xlu1 %v4159_v7, %s3399_s14 }
 0x31a   :  { %2881 = vrot.lane.b32.xlu0 %v4159_v7, %s3401_s16  ;;  %2877 = vrot.lane.b32.xlu2 %v4165_v43, %s3401_s16 }
 0x31b   :  { %2776 = vrot.lane.b32.xlu1 %v4140_v6, %s3400_s15 }
 0x322   :  { %2879 = vrot.lane.b32.xlu2 %v4140_v6, %s3401_s16 }
 0x323   :  { %2883 = vrot.lane.b32.xlu1 %v4162_v40, %s3401_s16 }
 0x32c   :  { %v2080_v57 = vpop.permute.xlu2 %2079 }
 0x334   :  { %v2098_v60 = vpop.permute.xlu2 %2097 }
 0x33c   :  { %v2078_v32 = vpop.permute.xlu2 %2077 }
 0x33d   :  { %v2087_v41 = vsel %vm56_vm0, %v2078_v32, %v2080_v57 }
 0x33e   :  { %v2090_v3 = vmul.f32 %v2087_v41, %v3598_v36 }
 0x344   :  { %v2278_v9 = vpop.permute.xlu0 %2277  ;;  %v2282_v30 = vpop.permute.xlu2 %2281 }
 0x345   :  { %v2096_v25 = vpop.permute.xlu1 %2095 }
 0x346   :  { %v2102_v14 = vsel %vm77_vm1, %v2096_v25, %v2098_v60 }
 0x347   :  { %v2107_v22 = vmul.f32 %v2102_v14, %v3562_v18 }
 0x349   :  { %2167 = vmatpush.msra.mxu2 %v2107_v22 }
 0x34a   :  { %3205 = vmatmul.msk.f32.vlgmr.msra.gmra.mxu2 %vm90_vm2, %v2069_v54 }
 0x34c   :  { %v2100_v38 = vpop.permute.xlu0 %2099  ;;  %v2383_v0 = vpop.permute.xlu2 %2382 }
 0x34d   :  { %v2094_v55 = vpop.permute.xlu1 %2093  ;;  %v2101_v31 = vsel %vm77_vm1, %v2098_v60, %v2100_v38  ;;  %v4532_v60 = vld [vmem:[#allocation12_spill] sm:$0xff] }
 0x34e   :  { %v2103_v33 = vsel %vm77_vm1, %v2094_v55, %v2096_v25  ;;  %v2104_v18 = vsel %vm77_vm1, %v2100_v38, %v2094_v55  ;;  %v2108_v56 = vmul.f32 %v2101_v31, %v3565_v19  ;;  %v2068_v19 = vld [vmem:[%s4447_s3] sm:$0xff] }
 0x34f   :  { %v2106_v5 = vmul.f32 %v2103_v33, %v3559_v17  ;;  %v2105_v53 = vmul.f32 %v2104_v18, %v3556_v16  ;;  %v4536_v55 = vld [vmem:[#allocation9_spill] sm:$0xff]  ;;  %v4537_v33 = vld [vmem:[#allocation10_spill] sm:$0xff] }
 0x350   :  { %2187 = vmatpush.msra.mxu3 %v2108_v56  ;;  %v2073_v56 = vld [vmem:[%s4447_s3 + $0x28] sm:$0xff] }
 0x351   :  { %2127 = vmatpush.msra.mxu0 %v2105_v53  ;;  %2147 = vmatpush.msra.mxu1 %v2106_v5  ;;  %v4538_v5 = vld [vmem:[#allocation16_spill] sm:$0xff] }
 0x352   :  { %3203 = vmatmul.msk.f32.vlgmr.msra.gmra.mxu0 %vm90_vm2, %v2069_v54  ;;  %3204 = vmatmul.msk.f32.vlgmr.msra.gmra.mxu1 %vm90_vm2, %v2069_v54 }
 0x353   :  { %2230 = vmatpush.msrb.mxu1 %v2090_v3  ;;  %3206 = vmatmul.msk.f32.vlgmr.msra.gmra.mxu3 %vm90_vm2, %v2069_v54  ;;  %v4534_v54 = vld [vmem:[#allocation13_spill] sm:$0xff] }
 0x354   :  { %v2082_v12 = vpop.permute.xlu0 %2081  ;;  %v4254_v36 = vpop.permute.xlu2 %2568 }
 0x355   :  { %v2381_v15 = vpop.permute.xlu1 %2380  ;;  %v2086_v17 = vsel %vm56_vm0, %v2080_v57, %v2082_v12 }
 0x356   :  { %v2091_v16 = vmul.f32 %v2086_v17, %v3568_v20 }
 0x358   :  { %2250 = vmatpush.msrb.mxu2 %v2091_v16 }
 0x359   :  { %3209 = vmatmul.msk.f32.vlgmr.msrb.gmra.mxu2 %vm90_vm2, %v2068_v19 }
 0x35a   :  { %3208 = vmatmul.msk.f32.vlgmr.msrb.gmra.mxu1 %vm90_vm2, %v2068_v19 }
 0x35c   :  { %v2276_v13 = vpop.permute.xlu0 %2275 }
 0x35d   :  { %v2084_v39 = vpop.permute.xlu1 %2083  ;;  %v2285_v11 = vsel %vm265_vm3, %v2276_v13, %v2278_v9  ;;  %v2286_v45 = vsel %vm265_vm3, %v2282_v30, %v2276_v13 }
 0x35e   :  { %v2085_v20 = vsel %vm56_vm0, %v2082_v12, %v2084_v39  ;;  %v2088_v47 = vsel %vm56_vm0, %v2084_v39, %v2078_v32  ;;  %v2288_v2 = vmul.f32 %v2285_v11, %v3590_v34  ;;  %v2287_v49 = vmul.f32 %v2286_v45, %v3629_v51  ;;  %v2571_v34 = vpop.permute.xlu2 %2570  ;;  %v4544_v39 = vld [vmem:[#allocation14_spill] sm:$0xff]  ;;  %v4545_v45 = vld [vmem:[#allocation15_spill] sm:$0xff] }
 0x35f   :  { %v2089_v42 = vmul.f32 %v2088_v47, %v3595_v35  ;;  %v2092_v48 = vmul.f32 %v2085_v20, %v3601_v37  ;;  %v2387_v51 = vsel %vm373_vm4, %v2381_v15, %v2383_v0  ;;  %v2578_v1 = vsel %vm568_vm5, %v4254_v36, %v2571_v34  ;;  %v2074_v47 = vld [vmem:[%s4447_s3 + $0x30] sm:$0xff] }
 0x360   :  { %2329 = vmatpush.msra.mxu1 %v2288_v2  ;;  %v2392_v59 = vmul.f32 %v2387_v51, %v3653_v63  ;;  %vm4533_vm0 = vcmp.lt.s32.totalorder %v3531_v10, 113  ;;  %v4546_v2 = vld [vmem:[#allocation18_spill] sm:$0xff]  ;;  %v4551_v51 = vld [vmem:[#allocation19_spill] sm:$0xff] }
 0x361   :  { %2210 = vmatpush.msrb.mxu0 %v2089_v42  ;;  %2270 = vmatpush.msrb.mxu3 %v2092_v48  ;;  %vm4535_vm1 = vmmov %vm4533_vm0 }
 0x362   :  { %3207 = vmatmul.msk.f32.vlgmr.msrb.gmra.mxu0 %vm90_vm2, %v2068_v19  ;;  %3210 = vmatmul.msk.f32.vlgmr.msrb.gmra.mxu3 %vm90_vm2, %v2068_v19  ;;  %vm4542_vm13 = vmmov %vm4533_vm0 }
 0x363   :  { %2309 = vmatpush.msra.mxu0 %v2287_v49  ;;  %3212 = vmatmul.msk.f32.vlgmr.msra.gmra.mxu1 %vm90_vm2, %v2070_v26 }
 0x364   :  { %v2385_v35 = vpop.permute.xlu0 %2384 }
 0x365   :  { %v2280_v21 = vpop.permute.xlu1 %2279  ;;  %v2386_v37 = vsel %vm373_vm4, %v2383_v0, %v2385_v35 }
 0x366   :  { %v2283_v8 = vsel %vm265_vm3, %v2280_v21, %v2282_v30  ;;  %v2284_v44 = vsel %vm265_vm3, %v2278_v9, %v2280_v21  ;;  %v2393_v29 = vmul.f32 %v2386_v37, %v3656_v4  ;;  %v2072_v9 = vld [vmem:[%s4447_s3 + $0x20] sm:$0xff]  ;;  %vm4539_vm3 = vcmp.lt.s32.totalorder %v3531_v10, 112 }
 0x367   :  { %v2289_v28 = vmul.f32 %v2284_v44, %v3626_v50  ;;  %v2290_v58 = vmul.f32 %v2283_v8, %v3632_v52  ;;  %v2678_v52 = vpop.permute.xlu2 %2677  ;;  %vm4548_vm6 = vmmov %vm4539_vm3  ;;  %v4552_v44 = vld [vmem:[#allocation20_spill] sm:$0xff] }
 0x368   :  { %vm4549_vm7 = vmmov %vm4539_vm3 }
 0x369   :  { %2349 = vmatpush.msra.mxu2 %v2289_v28  ;;  %2369 = vmatpush.msra.mxu3 %v2290_v58  ;;  %v2075_v58 = vld [vmem:[%s4447_s3 + $0x38] sm:$0xff] }
 0x36a   :  { %3211 = vmatmul.msk.f32.vlgmr.msra.gmra.mxu0 %vm90_vm2, %v2070_v26  ;;  %3213 = vmatmul.msk.f32.vlgmr.msra.gmra.mxu2 %vm90_vm2, %v2070_v26 }
 0x36b   :  { %3214 = vmatmul.msk.f32.vlgmr.msra.gmra.mxu3 %vm90_vm2, %v2070_v26  ;;  %2452 = vmatpush.msrb.mxu2 %v2392_v59 }
 0x36c   :  { %2472 = vmatpush.msrb.mxu3 %v2393_v29  ;;  %v2672_v46 = vpop.permute.xlu0 %2671  ;;  %v3310_v29 = vld [vmem:[%s4448_s4 + $0x28] ss:$0 sm:$0xff] }
 0x36d   :  { %2539 = vmatpush.msra.mxu2 %v4159_v7  ;;  %v2379_v50 = vpop.permute.xlu1 %2378  ;;  %v4531_v7 = vld [vmem:[#allocation11_spill] sm:$0xff]  ;;  %v2682_v41 = vsel %vm4535_vm1, %v2678_v52, %v2672_v46 }
 0x36e   :  { %2559 = vmatpush.msra.mxu3 %v4162_v40  ;;  %v2388_v63 = vsel %vm373_vm4, %v2379_v50, %v2381_v15  ;;  %v2389_v4 = vsel %vm373_vm4, %v2385_v35, %v2379_v50  ;;  %v2580_v40 = vmul.f32 %v2578_v1, %v4531_v7  ;;  %v2686_v53 = vmul.f32 %v2682_v41, %v4538_v5  ;;  %vm4540_vm4 = vmmov %vm4539_vm3  ;;  %v2076_v7 = vld [vmem:[%s4447_s3 + $0x40] sm:$0xff] }
 0x36f   :  { %v2390_v61 = vmul.f32 %v2389_v4, %v3674_v23  ;;  %v2391_v62 = vmul.f32 %v2388_v63, %v3677_v24  ;;  %v2779_v25 = vpop.permute.xlu2 %2778 }
 0x371   :  { %2412 = vmatpush.msrb.mxu0 %v2390_v61  ;;  %2432 = vmatpush.msrb.mxu1 %v2391_v62  ;;  %v3312_v61 = vld [vmem:[%s4448_s4 + $0x30] ss:$0 sm:$0xff] }
 0x372   :  { %3215 = vmatmul.msk.f32.vlgmr.msrb.gmra.mxu0 %vm90_vm2, %v2071_v27  ;;  %3216 = vmatmul.msk.f32.vlgmr.msrb.gmra.mxu1 %vm90_vm2, %v2071_v27 }
 0x373   :  { %3217 = vmatmul.msk.f32.vlgmr.msrb.gmra.mxu2 %vm90_vm2, %v2071_v27  ;;  %3218 = vmatmul.msk.f32.vlgmr.msrb.gmra.mxu3 %vm90_vm2, %v2071_v27  ;;  %v3313_v27 = vld [vmem:[%s4448_s4 + $0x38] ss:$0 sm:$0xff] }
 0x374   :  { %2499 = vmatpush.msra.mxu0 %v4165_v43  ;;  %2519 = vmatpush.msra.mxu1 %v4140_v6  ;;  %v2573_v23 = vpop.permute.xlu0 %2572 }
 0x375   :  { %v2775_v24 = vpop.permute.xlu1 %2774  ;;  %v2577_v57 = vsel %vm568_vm5, %v2571_v34, %v2573_v23 }
 0x376   :  { %2602 = vmatpush.msrb.mxu0 %v2580_v40  ;;  %v2581_v32 = vmul.f32 %v2577_v57, %v4532_v60 }
 0x377   :  { %v2878_v3 = vpop.permute.xlu2 %2877 }
 0x378   :  { %2622 = vmatpush.msrb.mxu1 %v2581_v32 }
 0x37a   :  { %3219 = vmatmul.msk.f32.vlgmr.msra.gmra.mxu0 %vm90_vm2, %v2072_v9  ;;  %3220 = vmatmul.msk.f32.vlgmr.msra.gmra.mxu1 %vm90_vm2, %v2072_v9 }
 0x37b   :  { %3221 = vmatmul.msk.f32.vlgmr.msra.gmra.mxu2 %vm90_vm2, %v2072_v9  ;;  %3222 = vmatmul.msk.f32.vlgmr.msra.gmra.mxu3 %vm90_vm2, %v2072_v9 }
 0x37c   :  { %v2674_v6 = vpop.permute.xlu0 %2673 }
 0x37d   :  { %v2575_v43 = vpop.permute.xlu1 %2574  ;;  %v2681_v14 = vsel %vm4533_vm0, %v2672_v46, %v2674_v6  ;;  %v3311_v46 = vld [vmem:[%s4448_s4 + $0x20] ss:$0 sm:$0xff]  ;;  %s3094_s4 = sshll.u32 %s4450_s6, 4  ;;  %s3095_s4 = int_to_ptr.hbm [resolvable:$true] %s3094_s4 }
 0x37e   :  { %v2576_v30 = vsel %vm568_vm5, %v2573_v23, %v2575_v43  ;;  %v2579_v22 = vsel %vm568_vm5, %v2575_v43, %v4254_v36  ;;  %v2683_v38 = vmul.f32 %v2681_v14, %v4534_v54  ;;  %vm4541_vm5 = vmmov %vm4533_vm0  ;;  %v4543_v36 = vld [vmem:[#allocation17_spill] sm:$0xff]  ;;  %3097 = dma.vmem_to_hbm [thread:$0]  %s3093_s29, 512, %s3095_s4, [#allocation5]  }
 0x37f   :  { %v2582_v31 = vmul.f32 %v2576_v30, %v4536_v55  ;;  %v2583_v18 = vmul.f32 %v2579_v22, %v4537_v33  ;;  %v2880_v48 = vpop.permute.xlu2 %2879 }
 0x380   :  { %2705 = vmatpush.msra.mxu0 %v2683_v38  ;;  %v2887_v37 = vsel %vm4550_vm8, %v2878_v3, %v2880_v48 }
 0x381   :  { %2642 = vmatpush.msrb.mxu2 %v2582_v31  ;;  %2662 = vmatpush.msrb.mxu3 %v2583_v18  ;;  %v2889_v50 = vmul.f32 %v3311_v46, %v2887_v37 }
 0x382   :  { %3223 = vmatmul.msk.f32.vlgmr.msrb.gmra.mxu0 %vm90_vm2, %v2073_v56  ;;  %3224 = vmatmul.msk.f32.vlgmr.msrb.gmra.mxu1 %vm90_vm2, %v2073_v56 }
 0x383   :  { %3225 = vmatmul.msk.f32.vlgmr.msrb.gmra.mxu2 %vm90_vm2, %v2073_v56  ;;  %3226 = vmatmul.msk.f32.vlgmr.msrb.gmra.mxu3 %vm90_vm2, %v2073_v56 }
 0x384   :  { %2765 = vmatpush.msra.mxu3 %v2686_v53  ;;  %v2781_v0 = vpop.permute.xlu0 %2780 }
 0x385   :  { %v2676_v12 = vpop.permute.xlu1 %2675  ;;  %v2782_v15 = vsel %vm4539_vm3, %v2779_v25, %v2781_v0  ;;  %v2785_v17 = vsel %vm4540_vm4, %v2781_v0, %v2775_v24 }
 0x386   :  { %v2679_v16 = vsel %vm4541_vm5, %v2676_v12, %v2678_v52  ;;  %v2680_v19 = vsel %vm4542_vm13, %v2674_v6, %v2676_v12  ;;  %v2789_v13 = vmul.f32 %v2785_v17, %v4543_v36  ;;  %v2788_v42 = vmul.f32 %v2782_v15, %v4546_v2 }
 0x387   :  { %v2684_v11 = vmul.f32 %v2680_v19, %v4544_v39  ;;  %v2685_v20 = vmul.f32 %v2679_v16, %v4545_v45 }
 0x388   :  { %2868 = vmatpush.msrb.mxu3 %v2789_v13 }
 0x389   :  { %2725 = vmatpush.msra.mxu1 %v2684_v11  ;;  %2745 = vmatpush.msra.mxu2 %v2685_v20 }
 0x38a   :  { %3227 = vmatmul.msk.f32.vlgmr.msra.gmra.mxu0 %vm90_vm2, %v2074_v47  ;;  %3228 = vmatmul.msk.f32.vlgmr.msra.gmra.mxu1 %vm90_vm2, %v2074_v47 }
 0x38b   :  { %3229 = vmatmul.msk.f32.vlgmr.msra.gmra.mxu2 %vm90_vm2, %v2074_v47  ;;  %3230 = vmatmul.msk.f32.vlgmr.msra.gmra.mxu3 %vm90_vm2, %v2074_v47 }
 0x38c   :  { %2848 = vmatpush.msrb.mxu2 %v2788_v42  ;;  %v2882_v49 = vpop.permute.xlu0 %2881 }
 0x38d   :  { %v2777_v26 = vpop.permute.xlu1 %2776  ;;  %v2886_v34 = vsel %vm4547_vm15, %v2880_v48, %v2882_v49 }
 0x38e   :  { %v2783_v35 = vsel %vm4548_vm6, %v2777_v26, %v2779_v25  ;;  %v2784_v21 = vsel %vm4549_vm7, %v2775_v24, %v2777_v26  ;;  %v2890_v59 = vmul.f32 %v3310_v29, %v2886_v34 }
 0x38f   :  { %v2786_v8 = vmul.f32 %v2784_v21, %v4551_v51  ;;  %v2787_v28 = vmul.f32 %v2783_v35, %v4552_v44 }
 0x391   :  { %2808 = vmatpush.msrb.mxu0 %v2786_v8  ;;  %2828 = vmatpush.msrb.mxu1 %v2787_v28 }
 0x392   :  { %3231 = vmatmul.msk.f32.vlgmr.msrb.gmra.mxu0 %vm90_vm2, %v2075_v58  ;;  %3232 = vmatmul.msk.f32.vlgmr.msrb.gmra.mxu1 %vm90_vm2, %v2075_v58 }
 0x393   :  { %3233 = vmatmul.msk.f32.vlgmr.msrb.gmra.mxu2 %vm90_vm2, %v2075_v58  ;;  %3234 = vmatmul.msk.f32.vlgmr.msrb.gmra.mxu3 %vm90_vm2, %v2075_v58 }
 0x394   :  { %2911 = vmatpush.msra.mxu0 %v2889_v50  ;;  %2931 = vmatpush.msra.mxu1 %v2890_v59 }
 0x395   :  { %v2884_v52 = vpop.permute.xlu1 %2883 }
 0x396   :  { %v2885_v63 = vsel %vm4553_vm9, %v2882_v49, %v2884_v52  ;;  %v2888_v4 = vsel %vm4554_vm14, %v2884_v52, %v2878_v3 }
 0x397   :  { %v2891_v62 = vmul.f32 %v3312_v61, %v2885_v63  ;;  %v2892_v1 = vmul.f32 %v3313_v27, %v2888_v4 }
 0x399   :  { %2951 = vmatpush.msra.mxu2 %v2891_v62  ;;  %2971 = vmatpush.msra.mxu3 %v2892_v1 }
 0x39a   :  { %3235 = vmatmul.msk.f32.vlgmr.msra.gmra.mxu0 %vm90_vm2, %v2076_v7  ;;  %3236 = vmatmul.msk.f32.vlgmr.msra.gmra.mxu1 %vm90_vm2, %v2076_v7 }
 0x39b   :  { %3237 = vmatmul.msk.f32.vlgmr.msra.gmra.mxu2 %vm90_vm2, %v2076_v7  ;;  %3238 = vmatmul.msk.f32.vlgmr.msra.gmra.mxu3 %vm90_vm2, %v2076_v7 }
 0x3cd   :  { %v2169_v23 = vpop.f32.mrf.mxu2 }
 0x3cf   :  { %v2149_v10 = vpop.f32.mrf.mxu1  ;;  %v2129_v40 = vpop.f32.mrf.mxu0 }
 0x3d6   :  { %v2189_v24 = vpop.f32.mrf.mxu3 }
 0x3d7   :  { %v2232_v57 = vpop.f32.mrf.mxu1 }
 0x3d8   :  { %v2233_v12 = vadd.f32 %v2232_v57, %v2149_v10 }
 0x3dc   :  { %v2252_v32 = vpop.f32.mrf.mxu2 }
 0x3dd   :  { %v2253_v2 = vadd.f32 %v2252_v32, %v2169_v23 }
 0x3df   :  { %v2212_v60 = vpop.f32.mrf.mxu0 }
 0x3e0   :  { %v2331_v25 = vpop.f32.mrf.mxu1  ;;  %v2213_v15 = vadd.f32 %v2212_v60, %v2129_v40 }
 0x3e1   :  { %v2375_v17 = vadd.f32 %v2331_v25, %v2233_v12 }
 0x3e5   :  { %v2272_v9 = vpop.f32.mrf.mxu3 }
 0x3e6   :  { %v2273_v42 = vadd.f32 %v2272_v9, %v2189_v24 }
 0x3e7   :  { %v2311_v6 = vpop.f32.mrf.mxu0 }
 0x3e8   :  { %v2374_v16 = vadd.f32 %v2311_v6, %v2213_v15 }
 0x3ed   :  { %v2351_v43 = vpop.f32.mrf.mxu2 }
 0x3ee   :  { %v2371_v14 = vpop.f32.mrf.mxu3  ;;  %v2376_v26 = vadd.f32 %v2351_v43, %v2253_v2 }
 0x3ef   :  { %v2414_v30 = vpop.f32.mrf.mxu0  ;;  %v2434_v22 = vpop.f32.mrf.mxu1  ;;  %v2377_v34 = vadd.f32 %v2371_v14, %v2273_v42 }
 0x3f0   :  { %v2477_v19 = vadd.f32 %v2414_v30, %v2374_v16  ;;  %v2478_v36 = vadd.f32 %v2434_v22, %v2375_v17 }
 0x3f6   :  { %v2454_v54 = vpop.f32.mrf.mxu2  ;;  %v2474_v38 = vpop.f32.mrf.mxu3 }
 0x3f7   :  { %v2501_v41 = vpop.f32.mrf.mxu0  ;;  %v2521_v55 = vpop.f32.mrf.mxu1  ;;  %v2479_v37 = vadd.f32 %v2454_v54, %v2376_v26  ;;  %v2480_v51 = vadd.f32 %v2474_v38, %v2377_v34 }
 0x3f8   :  { %v2564_v20 = vadd.f32 %v2501_v41, %v2477_v19  ;;  %v2565_v47 = vadd.f32 %v2521_v55, %v2478_v36  ;;  %v3314_v19 = vld [vmem:[%s4444_s0] sm:$0xff] }
 0x3fe   :  { %v2541_v31 = vpop.f32.mrf.mxu2  ;;  %v2561_v33 = vpop.f32.mrf.mxu3 }
 0x3ff   :  { %v2604_v18 = vpop.f32.mrf.mxu0  ;;  %v2624_v56 = vpop.f32.mrf.mxu1  ;;  %v2566_v29 = vadd.f32 %v2541_v31, %v2479_v37  ;;  %v2567_v59 = vadd.f32 %v2561_v33, %v2480_v51 }
 0x400   :  { %v2667_v48 = vadd.f32 %v2604_v18, %v2564_v20  ;;  %v2668_v49 = vadd.f32 %v2624_v56, %v2565_v47 }
 0x406   :  { %v2644_v5 = vpop.f32.mrf.mxu2  ;;  %v2664_v53 = vpop.f32.mrf.mxu3 }
 0x407   :  { %v2707_v3 = vpop.f32.mrf.mxu0  ;;  %v2727_v0 = vpop.f32.mrf.mxu1  ;;  %v2669_v4 = vadd.f32 %v2644_v5, %v2566_v29  ;;  %v2670_v61 = vadd.f32 %v2664_v53, %v2567_v59 }
 0x408   :  { %v2770_v35 = vadd.f32 %v2707_v3, %v2667_v48  ;;  %v2771_v21 = vadd.f32 %v2727_v0, %v2668_v49 }
 0x40e   :  { %v2747_v13 = vpop.f32.mrf.mxu2  ;;  %v2767_v39 = vpop.f32.mrf.mxu3 }
 0x40f   :  { %v2810_v11 = vpop.f32.mrf.mxu0  ;;  %v2830_v45 = vpop.f32.mrf.mxu1  ;;  %v2772_v1 = vadd.f32 %v2747_v13, %v2669_v4  ;;  %v2773_v7 = vadd.f32 %v2767_v39, %v2670_v61  ;;  %v3315_v13 = vld [vmem:[%s4444_s0 + $0x8] sm:$0xff] }
 0x410   :  { %v2873_v8 = vadd.f32 %v2810_v11, %v2770_v35  ;;  %v2874_v44 = vadd.f32 %v2830_v45, %v2771_v21 }
 0x416   :  { %v2850_v28 = vpop.f32.mrf.mxu2  ;;  %v2870_v58 = vpop.f32.mrf.mxu3 }
 0x417   :  { %v2913_v46 = vpop.f32.mrf.mxu0  ;;  %v2933_v50 = vpop.f32.mrf.mxu1  ;;  %v2875_v10 = vadd.f32 %v2850_v28, %v2772_v1  ;;  %v2876_v40 = vadd.f32 %v2870_v58, %v2773_v7  ;;  %v3316_v7 = vld [vmem:[%s4444_s0 + $0x10] sm:$0xff] }
 0x418   :  { %v2976_v52 = vadd.f32 %v2913_v46, %v2873_v8  ;;  %v2977_v63 = vadd.f32 %v2933_v50, %v2874_v44 }
 0x41a   :  { %v3239_v62 = vmul.f32 -1.442695, %v2976_v52  ;;  %v3240_v27 = vmul.f32 -1.442695, %v2977_v63  ;;  %v3064_v36 = vadd.f32 %v3314_v19, %v2976_v52  ;;  %v3065_v39 = vadd.f32 %v3315_v13, %v2977_v63 }
 0x41c   :  { %3294 = vpow2.f32 %v3239_v62 }
 0x41d   :  { %3296 = vpow2.f32 %v3240_v27 }
 0x41e   :  { %v2953_v23 = vpop.f32.mrf.mxu2  ;;  %v2973_v24 = vpop.f32.mrf.mxu3 }
 0x41f   :  { %v4403_v57 = vadd.f32 %v2953_v23, %v2875_v10  ;;  %v4405_v60 = vadd.f32 %v2973_v24, %v2876_v40 }
 0x421   :  { %v3241_v32 = vmul.f32 -1.442695, %v4403_v57  ;;  %v3242_v9 = vmul.f32 -1.442695, %v4405_v60  ;;  %v3066_v10 = vadd.f32 %v3316_v7, %v4403_v57  ;;  %v3317_v57 = vld [vmem:[%s4444_s0 + $0x18] sm:$0xff] }
 0x422   :  { %v3295_v25 = vpop.eup %3294 }
 0x423   :  { %v3297_v6 = vpop.eup %3296  ;;  %v2992_v43 = vadd.f32 1.0, %v3295_v25  ;;  %3298 = vpow2.f32 %v3241_v32 }
 0x424   :  { %v2993_v14 = vadd.f32 1.0, %v3297_v6  ;;  %3300 = vpow2.f32 %v3242_v9  ;;  %v3067_v9 = vadd.f32 %v3317_v57, %v4405_v60 }
 0x425   :  { %3302 = vrcp.f32 %v2992_v43  ;;  %v3005_v56 = vand.u32 2147483647, %v2992_v43  ;;  %v3007_v5 = vand.u32 2147483648, %v2992_v43  ;;  %vm3001_vm11 = vweird.f32 %v2992_v43 }
 0x426   :  { %3304 = vrcp.f32 %v2993_v14  ;;  %v3020_v0 = vand.u32 2147483647, %v2993_v14  ;;  %v3022_v12 = vand.u32 2147483648, %v2993_v14  ;;  %vm3016_vm0 = vweird.f32 %v2993_v14 }
 0x427   :  { %v3008_v11 = vor.u32 1.1754944e-38, %v3007_v5  ;;  %vm3006_vm1 = vcmp.eq.f32.partialorder %v3005_v56, 8.507059e+37 }
 0x428   :  { %vm3021_vm4 = vcmp.eq.f32.partialorder %v3020_v0, 8.507059e+37  ;;  %v3023_v42 = vor.u32 1.1754944e-38, %v3022_v12 }
 0x429   :  { %v3299_v30 = vpop.eup %3298 }
 0x42a   :  { %v3301_v22 = vpop.eup %3300  ;;  %v4409_v54 = vadd.f32 1.0, %v3299_v30 }
 0x42b   :  { %v3303_v38 = vpop.eup %3302  ;;  %v4411_v41 = vadd.f32 1.0, %v3301_v22 }
 0x42c   :  { %v3305_v55 = vpop.eup %3304  ;;  %v2997_v31 = vmul.f32 %v3303_v38, %v2992_v43  ;;  %3306 = vrcp.f32 %v4409_v54  ;;  %vm3002_vm2 = vweird.f32 %v3303_v38  ;;  %v3035_v37 = vand.u32 2147483647, %v4409_v54 }
 0x42d   :  { %v3012_v33 = vmul.f32 %v3305_v55, %v2993_v14  ;;  %3308 = vrcp.f32 %v4411_v41  ;;  %vm3017_vm10 = vweird.f32 %v3305_v55  ;;  %vm3003_vm12 = vmor %vm3001_vm11, %vm3002_vm2  ;;  %v3037_v51 = vand.u32 2147483648, %v4409_v54 }
 0x42e   :  { %v2998_v18 = vsub.f32 1.0, %v2997_v31  ;;  %vm3018_vm3 = vmor %vm3016_vm0, %vm3017_vm10  ;;  %vm3031_vm13 = vweird.f32 %v4409_v54  ;;  %v3050_v29 = vand.u32 2147483647, %v4411_v41  ;;  %v3052_v59 = vand.u32 2147483648, %v4411_v41 }
 0x42f   :  { %v3013_v53 = vsub.f32 1.0, %v3012_v33  ;;  %v3038_v63 = vor.u32 1.1754944e-38, %v3037_v51  ;;  %vm3036_vm7 = vcmp.eq.f32.partialorder %v3035_v37, 8.507059e+37  ;;  %vm3046_vm8 = vweird.f32 %v4411_v41 }
 0x430   :  { %v2999_v3 = vmul.f32 %v3303_v38, %v2998_v18  ;;  %v3053_v27 = vor.u32 1.1754944e-38, %v3052_v59  ;;  %vm3051_vm14 = vcmp.eq.f32.partialorder %v3050_v29, 8.507059e+37 }
 0x431   :  { %v3014_v15 = vmul.f32 %v3305_v55, %v3013_v53 }
 0x432   :  { %v3307_v17 = vpop.eup %3306  ;;  %v3000_v16 = vadd.f32 %v3303_v38, %v2999_v3 }
 0x433   :  { %v3015_v45 = vadd.f32 %v3305_v55, %v3014_v15  ;;  %v3027_v20 = vmul.f32 %v3307_v17, %v4409_v54  ;;  %v3309_v47 = vpop.eup %3308  ;;  %vm3032_vm5 = vweird.f32 %v3307_v17 }
 0x434   :  { %v3004_v2 = vsel %vm3003_vm12, %v3303_v38, %v3000_v16  ;;  %v3042_v34 = vmul.f32 %v3309_v47, %v4411_v41  ;;  %vm3047_vm15 = vweird.f32 %v3309_v47  ;;  %vm3033_vm6 = vmor %vm3031_vm13, %vm3032_vm5 }
 0x435   :  { %v3009_v48 = vsel %vm3006_vm1, %v3008_v11, %v3004_v2  ;;  %v3019_v49 = vsel %vm3018_vm3, %v3305_v55, %v3015_v45  ;;  %v3028_v26 = vsub.f32 1.0, %v3027_v20  ;;  %vm3048_vm9 = vmor %vm3046_vm8, %vm3047_vm15 }
 0x436   :  { %v3243_v35 = vadd.f32 -0.5, %v3009_v48  ;;  %v3024_v21 = vsel %vm3021_vm4, %v3023_v42, %v3019_v49  ;;  %v3043_v28 = vsub.f32 1.0, %v3042_v34 }
 0x437   :  { %v3244_v8 = vadd.f32 -0.5, %v3024_v21  ;;  %v3029_v44 = vmul.f32 %v3307_v17, %v3028_v26 }
 0x438   :  { %3060 = vst [vmem:[#allocation6] sm:$0xff] %v3243_v35  ;;  %v3068_v58 = vmul.f32 %v3243_v35, %v3064_v36  ;;  %v3044_v52 = vmul.f32 %v3309_v47, %v3043_v28 }
 0x439   :  { %3061 = vst [vmem:[#allocation6 + $0x8] sm:$0xff] %v3244_v8  ;;  %v3069_v46 = vmul.f32 %v3244_v8, %v3065_v39  ;;  %v3030_v50 = vadd.f32 %v3307_v17, %v3029_v44 }
 0x43a   :  { %3072 = vst [vmem:[#allocation2] sm:$0xff] %v3068_v58  ;;  %v3045_v61 = vadd.f32 %v3309_v47, %v3044_v52 }
 0x43b   :  { %3073 = vst [vmem:[#allocation2 + $0x8] sm:$0xff] %v3069_v46  ;;  %v3034_v4 = vsel %vm3033_vm6, %v3307_v17, %v3030_v50 }
 0x43c   :  { %v3039_v62 = vsel %vm3036_vm7, %v3038_v63, %v3034_v4  ;;  %v3049_v40 = vsel %vm3048_vm9, %v3309_v47, %v3045_v61 }
 0x43d   :  { %v3245_v1 = vadd.f32 -0.5, %v3039_v62  ;;  %v3054_v23 = vsel %vm3051_vm14, %v3053_v27, %v3049_v40 }
 0x43e   :  { %v3246_v32 = vadd.f32 -0.5, %v3054_v23 }
 0x43f   :  { %3062 = vst [vmem:[#allocation6 + $0x10] sm:$0xff] %v3245_v1  ;;  %v3070_v24 = vmul.f32 %v3245_v1, %v3066_v10 }
 0x440   :  { %v3071_v25 = vmul.f32 %v3246_v32, %v3067_v9  ;;  %3063 = vst [vmem:[#allocation6 + $0x18] sm:$0xff] %v3246_v32 }
 0x441   :  { %3074 = vst [vmem:[#allocation2 + $0x10] sm:$0xff] %v3070_v24  ;;  %3108 = dma.vmem_to_hbm [thread:$0]  %s3104_s23, 512, %s3106_s26, [#allocation5]  }
 0x442   :  { %3075 = vst [vmem:[#allocation2 + $0x18] sm:$0xff] %v3071_v25 }
 0x443   :  { %3086 = dma.vmem_to_hbm [thread:$0]  %s3082_s30, 512, %s3084_s10, [#allocation3]  }
 0x444   :  { %3390 = dma.done.wait [#allocation3], 512  }
 0x445   :  { %3391 = vsyncadd [#allocation3], 4294966784 }
 0x446   :  { %3392 = dma.done.wait [#allocation5], 1024  }
 0x447   :  { %3393 = vsyncadd [#allocation5], 4294966272 }
 0x448   :  { %3121 = vsyncpa [#allocation3], 1 }
 0x449   :  { %3122 = vsyncpa [#allocation5], 1 }

</bundles_post_ra>
